<compile_context>
chip_gen: v5e
topology: v5e:2x2
jax: 0.10.0
libtpu: 0.0.40
codegen_flags: <defaults>
</compile_context>

<pallas_src>
import jax
import jax.numpy as jnp
from jax.experimental import pallas as pl
from jax.experimental.pallas import tpu as pltpu


def _coord_att_kernel(x_ref, wh_ref, bh_ref, ww_ref, bw_ref,
                      w1_ref, b1_ref, w2_ref, b2_ref, w3_ref, b3_ref,
                      o_ref):
    """One batch element. x_ref: (1, H, W, C) NHWC; params resident in VMEM."""
    x = x_ref[0]                                              # (H, W, C) f32

    # Linear_h: depthwise (1,7) conv over W, BN folded into wh/bh  -> (H, C)
    xh = jnp.sum(x * wh_ref[...][None, :, :], axis=1) + bh_ref[...]
    # Linear_w: depthwise (7,1) conv over H, BN folded into ww/bw  -> (W, C)
    xw = jnp.sum(x * ww_ref[...][:, None, :], axis=0) + bw_ref[...]

    # conv1 (1x1, C->mip) + bn1 (folded) + h_swish.  Applying it to the two halves
    # separately is algebraically identical to cat -> conv1 -> bn1 -> act -> split.
    zh = jnp.dot(xh, w1_ref[...], preferred_element_type=jnp.float32) + b1_ref[...]
    zw = jnp.dot(xw, w1_ref[...], preferred_element_type=jnp.float32) + b1_ref[...]
    zh = zh * (jnp.clip(zh + 3.0, 0.0, 6.0) * (1.0 / 6.0))    # h_swish
    zw = zw * (jnp.clip(zw + 3.0, 0.0, 6.0) * (1.0 / 6.0))

    # conv2 / conv3 (1x1, mip->C) + sigmoid gates.
    ah = jnp.dot(zh, w2_ref[...], preferred_element_type=jnp.float32) + b2_ref[...]
    aw = jnp.dot(zw, w3_ref[...], preferred_element_type=jnp.float32) + b3_ref[...]
    ah = 1.0 / (1.0 + jnp.exp(-ah))                           # (H, C)
    aw = 1.0 / (1.0 + jnp.exp(-aw))                           # (W, C)

    # out[h, w, c] = ah[h, c] * aw[w, c]   (== expand-and-multiply in torch)
    o_ref[0] = (ah[:, None, :] * aw[None, :, :]).astype(o_ref.dtype)


def coord_att_head(x_nchw, params, *, eps=1e-5):
    """Forward pass of CoordAttHead (inference-mode BN), returns NCHW attention map."""
    N, C, H, W = x_nchw.shape

    def bn_fold(g, b, m, v):
        s = g * jax.lax.rsqrt(v + eps)
        return s, b - s * m

    sh, th = bn_fold(params["bn_h_g"], params["bn_h_b"], params["bn_h_m"], params["bn_h_v"])
    sw, tw = bn_fold(params["bn_w_g"], params["bn_w_b"], params["bn_w_m"], params["bn_w_v"])
    s1, t1 = bn_fold(params["bn1_g"], params["bn1_b"], params["bn1_m"], params["bn1_v"])

    wh_eff = (params["wh"] * sh[:, None]).T                   # (7, C)
    bh_eff = th.reshape(1, C)
    ww_eff = (params["ww"] * sw[:, None]).T                   # (7, C)
    bw_eff = tw.reshape(1, C)
    w1_eff = (params["conv1_w"] * s1[:, None]).T              # (C, MIP)
    b1_eff = (s1 * params["conv1_b"] + t1).reshape(1, -1)     # (1, MIP)
    w2 = params["conv2_w"].T                                  # (MIP, C)
    b2 = params["conv2_b"].reshape(1, C)
    w3 = params["conv3_w"].T                                  # (MIP, C)
    b3 = params["conv3_b"].reshape(1, C)
    MIP = w1_eff.shape[1]

    x_nhwc = jnp.transpose(x_nchw, (0, 2, 3, 1))              # (N, H, W, C): C lane-dense

    def full(shape):
        return pl.BlockSpec(shape, lambda n, _s=shape: (0,) * len(_s))

    out_nhwc = pl.pallas_call(
        _coord_att_kernel,
        out_shape=jax.ShapeDtypeStruct((N, H, W, C), x_nchw.dtype),
        grid_spec=pltpu.PrefetchScalarGridSpec(
            num_scalar_prefetch=0,
            grid=(N,),
            in_specs=[
                pl.BlockSpec((1, H, W, C), lambda n: (n, 0, 0, 0)),
                full((W, C)), full((1, C)),      # wh_eff, bh_eff
                full((H, C)), full((1, C)),      # ww_eff, bw_eff
                full((C, MIP)), full((1, MIP)),  # w1_eff, b1_eff
                full((MIP, C)), full((1, C)),    # w2, b2
                full((MIP, C)), full((1, C)),    # w3, b3
            ],
            out_specs=pl.BlockSpec((1, H, W, C), lambda n: (n, 0, 0, 0)),
        ),
        compiler_params=pltpu.CompilerParams(
            dimension_semantics=("parallel",)),
    )(x_nhwc, wh_eff, bh_eff, ww_eff, bw_eff, w1_eff, b1_eff, w2, b2, w3, b3)

    return jnp.transpose(out_nhwc, (0, 3, 1, 2))              # back to NCHW


def coord_att_head_ref(x, params, *, eps=1e-5):
    """Pure-JAX reference that mirrors the PyTorch forward (eval-mode BN)."""
    N, C, H, W = x.shape
    hp = jax.lax.Precision.HIGHEST

    def bn(y, g, b, m, v):
        s = g * jax.lax.rsqrt(v + eps)
        return y * s[None, :, None] + (b - s * m)[None, :, None]

    xh = jnp.einsum('nchw,cw->nch', x, params["wh"], precision=hp)        # (N,C,H)
    xh = bn(xh, params["bn_h_g"], params["bn_h_b"], params["bn_h_m"], params["bn_h_v"])
    xw = jnp.einsum('nchw,ch->ncw', x, params["ww"], precision=hp)        # (N,C,W)
    xw = bn(xw, params["bn_w_g"], params["bn_w_b"], params["bn_w_m"], params["bn_w_v"])

    y = jnp.concatenate([xh, xw], axis=2)                                 # (N,C,H+W)
    y = jnp.einsum('ncp,mc->nmp', y, params["conv1_w"], precision=hp) \
        + params["conv1_b"][None, :, None]
    y = bn(y, params["bn1_g"], params["bn1_b"], params["bn1_m"], params["bn1_v"])
    y = y * jnp.clip(y + 3.0, 0.0, 6.0) / 6.0                             # h_swish

    yh, yw = y[:, :, :H], y[:, :, H:]
    ah = jax.nn.sigmoid(jnp.einsum('nmh,cm->nch', yh, params["conv2_w"], precision=hp)
                        + params["conv2_b"][None, :, None])               # (N,C,H)
    aw = jax.nn.sigmoid(jnp.einsum('nmw,cm->ncw', yw, params["conv3_w"], precision=hp)
                        + params["conv3_b"][None, :, None])               # (N,C,W)
    return ah[:, :, :, None] * aw[:, :, None, :]                          # (N,C,H,W)


if __name__ == "__main__":
    key = jax.random.PRNGKey(0)
    ks = jax.random.split(key, 21)
    # CoordAttHead = CoordAtt(512, 512); mip = max(8, 512 // 32) = 16.
    # The torch forward requires H == W == 7 (kernel-7 pooling convs + expand).
    N, C, H, W, MIP = 2, 512, 7, 7, 16

    x = jax.random.normal(ks[0], (N, C, H, W), jnp.float32)

    params = dict(
        wh=0.2 * jax.random.normal(ks[1], (C, 7), jnp.float32),
        ww=0.2 * jax.random.normal(ks[2], (C, 7), jnp.float32),
        bn_h_g=1.0 + 0.1 * jax.random.normal(ks[3], (C,), jnp.float32),
        bn_h_b=0.1 * jax.random.normal(ks[4], (C,), jnp.float32),
        bn_h_m=0.1 * jax.random.normal(ks[5], (C,), jnp.float32),
        bn_h_v=jax.random.uniform(ks[6], (C,), jnp.float32, 0.5, 1.5),
        bn_w_g=1.0 + 0.1 * jax.random.normal(ks[7], (C,), jnp.float32),
        bn_w_b=0.1 * jax.random.normal(ks[8], (C,), jnp.float32),
        bn_w_m=0.1 * jax.random.normal(ks[9], (C,), jnp.float32),
        bn_w_v=jax.random.uniform(ks[10], (C,), jnp.float32, 0.5, 1.5),
        conv1_w=0.05 * jax.random.normal(ks[11], (MIP, C), jnp.float32),
        conv1_b=0.1 * jax.random.normal(ks[12], (MIP,), jnp.float32),
        bn1_g=1.0 + 0.1 * jax.random.normal(ks[13], (MIP,), jnp.float32),
        bn1_b=0.1 * jax.random.normal(ks[14], (MIP,), jnp.float32),
        bn1_m=0.1 * jax.random.normal(ks[15], (MIP,), jnp.float32),
        bn1_v=jax.random.uniform(ks[16], (MIP,), jnp.float32, 0.5, 1.5),
        conv2_w=0.3 * jax.random.normal(ks[17], (C, MIP), jnp.float32),
        conv2_b=0.1 * jax.random.normal(ks[18], (C,), jnp.float32),
        conv3_w=0.3 * jax.random.normal(ks[19], (C, MIP), jnp.float32),
        conv3_b=0.1 * jax.random.normal(ks[20], (C,), jnp.float32),
    )

    fwd = jax.jit(coord_att_head)
    y = fwd(x, params)
    jax.block_until_ready(y)

    y_ref = coord_att_head_ref(x, params)
    assert y.shape == x.shape and y.dtype == x.dtype
    max_err = float(jnp.max(jnp.abs(y - y_ref)))
    assert jnp.allclose(y, y_ref, atol=1e-2, rtol=1e-2), f"max abs err {max_err}"

    print("KERNEL_OK")
</pallas_src>

<mosaic_0001>
module attributes {stable_mosaic.version = 11 : i64} {
  func.func @_coord_att_kernel(%arg0: i32, %arg1: memref<1x7x7x512xf32, #tpu.memory_space<vmem>>, %arg2: memref<7x512xf32, #tpu.memory_space<vmem>>, %arg3: memref<1x512xf32, #tpu.memory_space<vmem>>, %arg4: memref<7x512xf32, #tpu.memory_space<vmem>>, %arg5: memref<1x512xf32, #tpu.memory_space<vmem>>, %arg6: memref<512x16xf32, #tpu.memory_space<vmem>>, %arg7: memref<1x16xf32, #tpu.memory_space<vmem>>, %arg8: memref<16x512xf32, #tpu.memory_space<vmem>>, %arg9: memref<1x512xf32, #tpu.memory_space<vmem>>, %arg10: memref<16x512xf32, #tpu.memory_space<vmem>>, %arg11: memref<1x512xf32, #tpu.memory_space<vmem>>, %arg12: memref<1x7x7x512xf32, #tpu.memory_space<vmem>>) attributes {dimension_semantics = [#tpu.dimension_semantics<parallel>], iteration_bounds = array<i64: 2>, scalar_prefetch = 0 : i64, scratch_operands = 0 : i64, tpu.core_type = #tpu.core_type<tc>, window_params = [{transform_indices = @transform_0, window_bounds = array<i64: 1, 7, 7, 512>}, {pipeline_mode = #tpu.pipeline_mode<synchronous>, transform_indices = @transform_1, window_bounds = array<i64: 7, 512>}, {pipeline_mode = #tpu.pipeline_mode<synchronous>, transform_indices = @transform_2, window_bounds = array<i64: 1, 512>}, {pipeline_mode = #tpu.pipeline_mode<synchronous>, transform_indices = @transform_3, window_bounds = array<i64: 7, 512>}, {pipeline_mode = #tpu.pipeline_mode<synchronous>, transform_indices = @transform_4, window_bounds = array<i64: 1, 512>}, {pipeline_mode = #tpu.pipeline_mode<synchronous>, transform_indices = @transform_5, window_bounds = array<i64: 512, 16>}, {pipeline_mode = #tpu.pipeline_mode<synchronous>, transform_indices = @transform_6, window_bounds = array<i64: 1, 16>}, {pipeline_mode = #tpu.pipeline_mode<synchronous>, transform_indices = @transform_7, window_bounds = array<i64: 16, 512>}, {pipeline_mode = #tpu.pipeline_mode<synchronous>, transform_indices = @transform_8, window_bounds = array<i64: 1, 512>}, {pipeline_mode = #tpu.pipeline_mode<synchronous>, transform_indices = @transform_9, window_bounds = array<i64: 16, 512>}, {pipeline_mode = #tpu.pipeline_mode<synchronous>, transform_indices = @transform_10, window_bounds = array<i64: 1, 512>}, {transform_indices = @transform_11, window_bounds = array<i64: 1, 7, 7, 512>}]} {
    %c0 = arith.constant 0 : index
    %c0_0 = arith.constant 0 : index
    %c0_1 = arith.constant 0 : index
    %c0_2 = arith.constant 0 : index
    %0 = vector.load %arg1[%c0, %c0_0, %c0_1, %c0_2] : memref<1x7x7x512xf32, #tpu.memory_space<vmem>>, vector<1x7x7x512xf32>
    %1 = vector.shape_cast %0 : vector<1x7x7x512xf32> to vector<7x7x512xf32>
    %c0_3 = arith.constant 0 : index
    %c0_4 = arith.constant 0 : index
    %2 = vector.load %arg2[%c0_3, %c0_4] : memref<7x512xf32, #tpu.memory_space<vmem>>, vector<7x512xf32>
    %3 = vector.shape_cast %2 : vector<7x512xf32> to vector<1x7x512xf32>
    %4 = vector.broadcast %3 : vector<1x7x512xf32> to vector<7x7x512xf32>
    %5 = arith.mulf %1, %4 : vector<7x7x512xf32>
    %cst = arith.constant dense<0.000000e+00> : vector<7x512xf32>
    %6 = vector.multi_reduction <add>, %5, %cst [1] : vector<7x7x512xf32> to vector<7x512xf32>
    %c0_5 = arith.constant 0 : index
    %c0_6 = arith.constant 0 : index
    %7 = vector.load %arg3[%c0_5, %c0_6] : memref<1x512xf32, #tpu.memory_space<vmem>>, vector<1x512xf32>
    %8 = vector.broadcast %7 : vector<1x512xf32> to vector<7x512xf32>
    %9 = arith.addf %6, %8 : vector<7x512xf32>
    %c0_7 = arith.constant 0 : index
    %c0_8 = arith.constant 0 : index
    %10 = vector.load %arg4[%c0_7, %c0_8] : memref<7x512xf32, #tpu.memory_space<vmem>>, vector<7x512xf32>
    %11 = vector.shape_cast %10 : vector<7x512xf32> to vector<7x1x512xf32>
    %12 = vector.broadcast %11 : vector<7x1x512xf32> to vector<7x7x512xf32>
    %13 = arith.mulf %1, %12 : vector<7x7x512xf32>
    %cst_9 = arith.constant dense<0.000000e+00> : vector<7x512xf32>
    %14 = vector.multi_reduction <add>, %13, %cst_9 [0] : vector<7x7x512xf32> to vector<7x512xf32>
    %c0_10 = arith.constant 0 : index
    %c0_11 = arith.constant 0 : index
    %15 = vector.load %arg5[%c0_10, %c0_11] : memref<1x512xf32, #tpu.memory_space<vmem>>, vector<1x512xf32>
    %16 = vector.broadcast %15 : vector<1x512xf32> to vector<7x512xf32>
    %17 = arith.addf %14, %16 : vector<7x512xf32>
    %c0_12 = arith.constant 0 : index
    %c0_13 = arith.constant 0 : index
    %18 = vector.load %arg6[%c0_12, %c0_13] : memref<512x16xf32, #tpu.memory_space<vmem>>, vector<512x16xf32>
    %cst_14 = arith.constant dense<0.000000e+00> : vector<7x16xf32>
    %19 = tpu.matmul %9, %18, %cst_14 {dimension_numbers = #tpu.dot_dimension_numbers<[1], [0], [0], [1], [0, 0, 1, 1], [], []>} : vector<7x512xf32>, vector<512x16xf32>, vector<7x16xf32> -> vector<7x16xf32>
    %c0_15 = arith.constant 0 : index
    %c0_16 = arith.constant 0 : index
    %20 = vector.load %arg7[%c0_15, %c0_16] : memref<1x16xf32, #tpu.memory_space<vmem>>, vector<1x16xf32>
    %21 = vector.broadcast %20 : vector<1x16xf32> to vector<7x16xf32>
    %22 = arith.addf %19, %21 : vector<7x16xf32>
    %c0_17 = arith.constant 0 : index
    %c0_18 = arith.constant 0 : index
    %23 = vector.load %arg6[%c0_17, %c0_18] : memref<512x16xf32, #tpu.memory_space<vmem>>, vector<512x16xf32>
    %cst_19 = arith.constant dense<0.000000e+00> : vector<7x16xf32>
    %24 = tpu.matmul %17, %23, %cst_19 {dimension_numbers = #tpu.dot_dimension_numbers<[1], [0], [0], [1], [0, 0, 1, 1], [], []>} : vector<7x512xf32>, vector<512x16xf32>, vector<7x16xf32> -> vector<7x16xf32>
    %c0_20 = arith.constant 0 : index
    %c0_21 = arith.constant 0 : index
    %25 = vector.load %arg7[%c0_20, %c0_21] : memref<1x16xf32, #tpu.memory_space<vmem>>, vector<1x16xf32>
    %26 = vector.broadcast %25 : vector<1x16xf32> to vector<7x16xf32>
    %27 = arith.addf %24, %26 : vector<7x16xf32>
    %cst_22 = arith.constant 3.000000e+00 : f32
    %28 = vector.broadcast %cst_22 : f32 to vector<7x16xf32>
    %29 = arith.addf %22, %28 : vector<7x16xf32>
    %cst_23 = arith.constant 0.000000e+00 : f32
    %cst_24 = arith.constant 6.000000e+00 : f32
    %30 = vector.broadcast %cst_23 : f32 to vector<7x16xf32>
    %31 = arith.maximumf %30, %29 : vector<7x16xf32>
    %32 = vector.broadcast %cst_24 : f32 to vector<7x16xf32>
    %33 = arith.minimumf %32, %31 : vector<7x16xf32>
    %cst_25 = arith.constant 0.166666672 : f32
    %34 = vector.broadcast %cst_25 : f32 to vector<7x16xf32>
    %35 = arith.mulf %33, %34 : vector<7x16xf32>
    %36 = arith.mulf %22, %35 : vector<7x16xf32>
    %cst_26 = arith.constant 3.000000e+00 : f32
    %37 = vector.broadcast %cst_26 : f32 to vector<7x16xf32>
    %38 = arith.addf %27, %37 : vector<7x16xf32>
    %cst_27 = arith.constant 0.000000e+00 : f32
    %cst_28 = arith.constant 6.000000e+00 : f32
    %39 = vector.broadcast %cst_27 : f32 to vector<7x16xf32>
    %40 = arith.maximumf %39, %38 : vector<7x16xf32>
    %41 = vector.broadcast %cst_28 : f32 to vector<7x16xf32>
    %42 = arith.minimumf %41, %40 : vector<7x16xf32>
    %cst_29 = arith.constant 0.166666672 : f32
    %43 = vector.broadcast %cst_29 : f32 to vector<7x16xf32>
    %44 = arith.mulf %42, %43 : vector<7x16xf32>
    %45 = arith.mulf %27, %44 : vector<7x16xf32>
    %c0_30 = arith.constant 0 : index
    %c0_31 = arith.constant 0 : index
    %46 = vector.load %arg8[%c0_30, %c0_31] : memref<16x512xf32, #tpu.memory_space<vmem>>, vector<16x512xf32>
    %cst_32 = arith.constant dense<0.000000e+00> : vector<7x512xf32>
    %47 = tpu.matmul %36, %46, %cst_32 {dimension_numbers = #tpu.dot_dimension_numbers<[1], [0], [0], [1], [0, 0, 1, 1], [], []>} : vector<7x16xf32>, vector<16x512xf32>, vector<7x512xf32> -> vector<7x512xf32>
    %c0_33 = arith.constant 0 : index
    %c0_34 = arith.constant 0 : index
    %48 = vector.load %arg9[%c0_33, %c0_34] : memref<1x512xf32, #tpu.memory_space<vmem>>, vector<1x512xf32>
    %49 = vector.broadcast %48 : vector<1x512xf32> to vector<7x512xf32>
    %50 = arith.addf %47, %49 : vector<7x512xf32>
    %c0_35 = arith.constant 0 : index
    %c0_36 = arith.constant 0 : index
    %51 = vector.load %arg10[%c0_35, %c0_36] : memref<16x512xf32, #tpu.memory_space<vmem>>, vector<16x512xf32>
    %cst_37 = arith.constant dense<0.000000e+00> : vector<7x512xf32>
    %52 = tpu.matmul %45, %51, %cst_37 {dimension_numbers = #tpu.dot_dimension_numbers<[1], [0], [0], [1], [0, 0, 1, 1], [], []>} : vector<7x16xf32>, vector<16x512xf32>, vector<7x512xf32> -> vector<7x512xf32>
    %c0_38 = arith.constant 0 : index
    %c0_39 = arith.constant 0 : index
    %53 = vector.load %arg11[%c0_38, %c0_39] : memref<1x512xf32, #tpu.memory_space<vmem>>, vector<1x512xf32>
    %54 = vector.broadcast %53 : vector<1x512xf32> to vector<7x512xf32>
    %55 = arith.addf %52, %54 : vector<7x512xf32>
    %cst_40 = arith.constant 0.000000e+00 : f32
    %56 = vector.broadcast %cst_40 : f32 to vector<7x512xf32>
    %57 = arith.subf %56, %50 : vector<7x512xf32>
    %58 = math.exp %57 : vector<7x512xf32>
    %cst_41 = arith.constant 1.000000e+00 : f32
    %59 = vector.broadcast %cst_41 : f32 to vector<7x512xf32>
    %60 = arith.addf %59, %58 : vector<7x512xf32>
    %cst_42 = arith.constant 1.000000e+00 : f32
    %61 = vector.broadcast %cst_42 : f32 to vector<7x512xf32>
    %62 = arith.divf %61, %60 : vector<7x512xf32>
    %cst_43 = arith.constant 0.000000e+00 : f32
    %63 = vector.broadcast %cst_43 : f32 to vector<7x512xf32>
    %64 = arith.subf %63, %55 : vector<7x512xf32>
    %65 = math.exp %64 : vector<7x512xf32>
    %cst_44 = arith.constant 1.000000e+00 : f32
    %66 = vector.broadcast %cst_44 : f32 to vector<7x512xf32>
    %67 = arith.addf %66, %65 : vector<7x512xf32>
    %cst_45 = arith.constant 1.000000e+00 : f32
    %68 = vector.broadcast %cst_45 : f32 to vector<7x512xf32>
    %69 = arith.divf %68, %67 : vector<7x512xf32>
    %70 = vector.shape_cast %62 : vector<7x512xf32> to vector<7x1x512xf32>
    %71 = vector.shape_cast %69 : vector<7x512xf32> to vector<1x7x512xf32>
    %72 = vector.broadcast %70 : vector<7x1x512xf32> to vector<7x7x512xf32>
    %73 = vector.broadcast %71 : vector<1x7x512xf32> to vector<7x7x512xf32>
    %74 = arith.mulf %72, %73 : vector<7x7x512xf32>
    %c0_46 = arith.constant 0 : index
    %c0_47 = arith.constant 0 : index
    %c0_48 = arith.constant 0 : index
    %c0_49 = arith.constant 0 : index
    %75 = vector.load %arg12[%c0_46, %c0_47, %c0_48, %c0_49] : memref<1x7x7x512xf32, #tpu.memory_space<vmem>>, vector<1x7x7x512xf32>
    %76 = vector.shape_cast %75 : vector<1x7x7x512xf32> to vector<7x7x512xf32>
    %77 = vector.shape_cast %74 : vector<7x7x512xf32> to vector<1x7x7x512xf32>
    tpu.vector_store %arg12[%c0_46, %c0_47, %c0_48, %c0_49], %77 {strides = array<i32>} : memref<1x7x7x512xf32, #tpu.memory_space<vmem>>, vector<1x7x7x512xf32>,
    return
  }
  func.func @transform_0(%arg0: i32) -> (i32, i32, i32, i32) {
    %c0_i32 = arith.constant 0 : i32
    %c0_i32_0 = arith.constant 0 : i32
    %c0_i32_1 = arith.constant 0 : i32
    %c0_i32_2 = arith.constant 0 : i32
    return %arg0, %c0_i32, %c0_i32_0, %c0_i32_1 : i32, i32, i32, i32
  }
  func.func @transform_1(%arg0: i32) -> (i32, i32) {
    %c0_i32 = arith.constant 0 : i32
    %c0_i32_0 = arith.constant 0 : i32
    %c0_i32_1 = arith.constant 0 : i32
    return %c0_i32, %c0_i32_0 : i32, i32
  }
  func.func @transform_2(%arg0: i32) -> (i32, i32) {
    %c0_i32 = arith.constant 0 : i32
    %c0_i32_0 = arith.constant 0 : i32
    %c0_i32_1 = arith.constant 0 : i32
    return %c0_i32, %c0_i32_0 : i32, i32
  }
  func.func @transform_3(%arg0: i32) -> (i32, i32) {
    %c0_i32 = arith.constant 0 : i32
    %c0_i32_0 = arith.constant 0 : i32
    %c0_i32_1 = arith.constant 0 : i32
    return %c0_i32, %c0_i32_0 : i32, i32
  }
  func.func @transform_4(%arg0: i32) -> (i32, i32) {
    %c0_i32 = arith.constant 0 : i32
    %c0_i32_0 = arith.constant 0 : i32
    %c0_i32_1 = arith.constant 0 : i32
    return %c0_i32, %c0_i32_0 : i32, i32
  }
  func.func @transform_5(%arg0: i32) -> (i32, i32) {
    %c0_i32 = arith.constant 0 : i32
    %c0_i32_0 = arith.constant 0 : i32
    %c0_i32_1 = arith.constant 0 : i32
    return %c0_i32, %c0_i32_0 : i32, i32
  }
  func.func @transform_6(%arg0: i32) -> (i32, i32) {
    %c0_i32 = arith.constant 0 : i32
    %c0_i32_0 = arith.constant 0 : i32
    %c0_i32_1 = arith.constant 0 : i32
    return %c0_i32, %c0_i32_0 : i32, i32
  }
  func.func @transform_7(%arg0: i32) -> (i32, i32) {
    %c0_i32 = arith.constant 0 : i32
    %c0_i32_0 = arith.constant 0 : i32
    %c0_i32_1 = arith.constant 0 : i32
    return %c0_i32, %c0_i32_0 : i32, i32
  }
  func.func @transform_8(%arg0: i32) -> (i32, i32) {
    %c0_i32 = arith.constant 0 : i32
    %c0_i32_0 = arith.constant 0 : i32
    %c0_i32_1 = arith.constant 0 : i32
    return %c0_i32, %c0_i32_0 : i32, i32
  }
  func.func @transform_9(%arg0: i32) -> (i32, i32) {
    %c0_i32 = arith.constant 0 : i32
    %c0_i32_0 = arith.constant 0 : i32
    %c0_i32_1 = arith.constant 0 : i32
    return %c0_i32, %c0_i32_0 : i32, i32
  }
  func.func @transform_10(%arg0: i32) -> (i32, i32) {
    %c0_i32 = arith.constant 0 : i32
    %c0_i32_0 = arith.constant 0 : i32
    %c0_i32_1 = arith.constant 0 : i32
    return %c0_i32, %c0_i32_0 : i32, i32
  }
  func.func @transform_11(%arg0: i32) -> (i32, i32, i32, i32) {
    %c0_i32 = arith.constant 0 : i32
    %c0_i32_0 = arith.constant 0 : i32
    %c0_i32_1 = arith.constant 0 : i32
    %c0_i32_2 = arith.constant 0 : i32
    return %arg0, %c0_i32, %c0_i32_0, %c0_i32_1 : i32, i32, i32, i32
  }
}

</mosaic_0001>

<bundles_post_ra>
// kernel: coord_att_head.1
= control target key start
LH: loop header
LB: loop body
LE: loop exit
PB: predicated region body
PF: predicated region fallthrough
CT: control target
= control target key end

     0   :  { %s1885_s17 = smov 0   ;;  %s3053_s0 = inlined_call_operand.vmem [shape: f32[2,7,7,512], index: 0, kind: input, shape index: {}]   ;;  %s3054_s1 = inlined_call_operand.vmem [shape: f32[7,512], index: 1, kind: input, shape index: {}]   ;;  %s3055_s2 = inlined_call_operand.vmem [shape: f32[1,512], index: 2, kind: input, shape index: {}]   ;;  %s3056_s3 = inlined_call_operand.vmem [shape: f32[7,512], index: 3, kind: input, shape index: {}]   ;;  %s3057_s4 = inlined_call_operand.vmem [shape: f32[1,512], index: 4, kind: input, shape index: {}]   ;;  %s3058_s5 = inlined_call_operand.vmem [shape: f32[512,16], index: 5, kind: input, shape index: {}]   ;;  %s3059_s6 = inlined_call_operand.vmem [shape: f32[1,16], index: 6, kind: input, shape index: {}]   ;;  %s3060_s7 = inlined_call_operand.vmem [shape: f32[16,512], index: 7, kind: input, shape index: {}]   ;;  %s3061_s8 = inlined_call_operand.vmem [shape: f32[1,512], index: 8, kind: input, shape index: {}]   ;;  %s3062_s9 = inlined_call_operand.vmem [shape: f32[16,512], index: 9, kind: input, shape index: {}]   ;;  %s3063_s10 = inlined_call_operand.vmem [shape: f32[1,512], index: 10, kind: input, shape index: {}]   ;;  %s3064_s11 = inlined_call_operand.vmem [shape: f32[2,7,7,512], index: 11, kind: output, shape index: {}]  }
   0x1 LB: > { %s1758_s18 = sadd.s32 4294967295, %s1823_s17   ;;  %p1762_p0 = scmp.ge.s32.totalorder %s1823_s17, 1  ;;  %s1823_s17 = sphi %s1885_s17, %s21_s17  }
   0x2   : > { %p337_p1 = scmp.lt.s32.totalorder %s1823_s17, 3 }
   0x4   : > { %p338_p2 = pnand %p1762_p0, %p337_p1 }
   0x6   : > { %341 = sbr.rel (%p338_p2) target bundleno = 497 (0x1f1), region = 64 }
   0xb   : > { %v1896_v0 = vld [vmem:[%s3058_s5 + $0x178] sm:$0xff]  ;;  %v1906_v2 = vld [vmem:[%s3058_s5 + $0x170] sm:$0xff]  ;;  %v1930_v6 = vld [vmem:[%s3058_s5 + $0x168] sm:$0xff]  ;;  %p1997_p3 = scmp.lt.s32.totalorder %s1758_s18, 1  ;;  %vm3108_vm0 = vcmask 1046528   ;;  %vm699_vm1 = vcmask 1041409  }
   0xc   : > { %v1901_v1 = vld [vmem:[%s3058_s5 + $0x78] sm:$0xff]  ;;  %1072 = vmatpush.msra.mxu2 %v1896_v0  ;;  %v1918_v4 = vld [vmem:[%s3058_s5 + $0x70] sm:$0xff]  ;;  %v1940_v8 = vld [vmem:[%s3058_s5 + $0x68] sm:$0xff]  ;;  %vm695_vm2 = vcmask 1042434   ;;  %vm701_vm3 = vcmask 1043459   ;;  %vm707_vm4 = vcmask 1044484  }
   0xd   : > { %1032 = vmatpush.msra.mxu0 %v1901_v1  ;;  %v1913_v3 = vld [vmem:[%s3058_s5 + $0x1f8] sm:$0xff]  ;;  %v1935_v7 = vld [vmem:[%s3058_s5 + $0x1f0] sm:$0xff]  ;;  %v1952_v10 = vld [vmem:[%s3058_s5 + $0x1e8] sm:$0xff]  ;;  %s3208_s18 = smov (!%p1997_p3, %s1758_s18), 1  ;;  %vm713_vm5 = vcmask 1045509   ;;  %vm719_vm6 = vcmask 1046534  }
   0xe   : > { %v1923_v5 = vld [vmem:[%s3058_s5 + $0xf8] sm:$0xff]  ;;  %1092 = vmatpush.msra.mxu3 %v1913_v3  ;;  %1073 = vmatpush.msra.mxu2 %v1906_v2  ;;  %v1947_v9 = vld [vmem:[%s3058_s5 + $0xf0] sm:$0xff]  ;;  %v1959_v11 = vld [vmem:[%s3058_s5 + $0x160] sm:$0xff]  ;;  %s1775_s20 = smul.u32 224, %s3208_s18  ;;  %vm3107_vm7 = vcmask 1040384   ;;  %vm3103_vm8 = vcmask 1041408  }
   0xf   : > { %1052 = vmatpush.msra.mxu1 %v1923_v5  ;;  %1033 = vmatpush.msra.mxu0 %v1918_v4  ;;  %v1964_v12 = vld [vmem:[%s3058_s5 + $0x60] sm:$0xff]  ;;  %v1969_v13 = vld [vmem:[%s3058_s5 + $0xe8] sm:$0xff]  ;;  %v1988_v16 = vld [vmem:[%s3058_s5 + $0x158] sm:$0xff]  ;;  %vm3109_vm9 = vcmask 1042433   ;;  %vm3106_vm10 = vcmask 1043458   ;;  %vm3105_vm11 = vcmask 1044483  }
  0x10   : > { %1093 = vmatpush.msra.mxu3 %v1935_v7  ;;  %1074 = vmatpush.msra.mxu2 %v1930_v6  ;;  %v1976_v14 = vld [vmem:[%s3058_s5 + $0x1e0] sm:$0xff]  ;;  %v1993_v17 = vld [vmem:[%s3058_s5 + $0x58] sm:$0xff]  ;;  %v2018_v20 = vld [vmem:[%s3058_s5 + $0x150] sm:$0xff]  ;;  %s2162_s21 = scalar_lea.vmem %s3053_s0, %s1775_s20  ;;  %vm3104_vm12 = vcmask 1045508   ;;  %vm3102_vm13 = vcmask 1046533   ;;  %vm3101_vm14 = vcmask 1045504   ;;  %s2971_s16 = scalar_lea.vmem %s3064_s11, %s1775_s20 }
  0x11   : > { %1053 = vmatpush.msra.mxu1 %v1947_v9  ;;  %1034 = vmatpush.msra.mxu0 %v1940_v8  ;;  %v1981_v15 = vld [vmem:[%s3058_s5 + $0xe0] sm:$0xff]  ;;  %v2006_v18 = vld [vmem:[%s3058_s5 + $0x1d8] sm:$0xff]  ;;  %v2023_v21 = vld [vmem:[%s3058_s5 + $0x50] sm:$0xff]  ;;  %vm1220_vm15 = vcmask 130048  }
  0x12   : > { %1094 = vmatpush.msra.mxu3 %v1952_v10  ;;  %1075 = vmatpush.msra.mxu2 %v1959_v11  ;;  %v2011_v19 = vld [vmem:[%s3058_s5 + $0xd8] sm:$0xff]  ;;  %v2030_v22 = vld [vmem:[%s3058_s5 + $0x1d0] sm:$0xff]  ;;  %v2042_v24 = vld [vmem:[%s3058_s5 + $0x148] sm:$0xff] }
  0x13   : > { %1054 = vmatpush.msra.mxu1 %v1969_v13  ;;  %1035 = vmatpush.msra.mxu0 %v1964_v12  ;;  %v2035_v23 = vld [vmem:[%s3058_s5 + $0xd0] sm:$0xff]  ;;  %v2047_v25 = vld [vmem:[%s3058_s5 + $0x48] sm:$0xff]  ;;  %v2072_v28 = vld [vmem:[%s3058_s5 + $0x140] sm:$0xff] }
  0x14   : > { %1095 = vmatpush.msra.mxu3 %v1976_v14  ;;  %1076 = vmatpush.msra.mxu2 %v1988_v16  ;;  %v2060_v26 = vld [vmem:[%s3058_s5 + $0x1c8] sm:$0xff]  ;;  %v2077_v29 = vld [vmem:[%s3058_s5 + $0x40] sm:$0xff]  ;;  %v2096_v32 = vld [vmem:[%s3058_s5 + $0x138] sm:$0xff] }
  0x15   : > { %1055 = vmatpush.msra.mxu1 %v1981_v15  ;;  %1036 = vmatpush.msra.mxu0 %v1993_v17  ;;  %v2065_v27 = vld [vmem:[%s3058_s5 + $0xc8] sm:$0xff]  ;;  %v2084_v30 = vld [vmem:[%s3058_s5 + $0x1c0] sm:$0xff]  ;;  %v2101_v33 = vld [vmem:[%s3058_s5 + $0x38] sm:$0xff] }
  0x16   : > { %1096 = vmatpush.msra.mxu3 %v2006_v18  ;;  %1077 = vmatpush.msra.mxu2 %v2018_v20  ;;  %v2089_v31 = vld [vmem:[%s3058_s5 + $0xc0] sm:$0xff]  ;;  %v2109_v34 = vld [vmem:[%s3058_s5 + $0x1b8] sm:$0xff]  ;;  %v2121_v36 = vld [vmem:[%s3058_s5 + $0x130] sm:$0xff] }
  0x17   : > { %1056 = vmatpush.msra.mxu1 %v2011_v19  ;;  %1037 = vmatpush.msra.mxu0 %v2023_v21  ;;  %3111 = vst [vmem:[#allocation2_spill] sm:$0xff] %v2109_v34  ;;  %v2114_v35 = vld [vmem:[%s3058_s5 + $0xb8] sm:$0xff]  ;;  %v2126_v37 = vld [vmem:[%s3058_s5 + $0x30] sm:$0xff]  ;;  %v2145_v40 = vld [vmem:[%s3058_s5 + $0x128] sm:$0xff] }
  0x18   : > { %1097 = vmatpush.msra.mxu3 %v2030_v22  ;;  %1078 = vmatpush.msra.mxu2 %v2042_v24  ;;  %3112 = vst [vmem:[#allocation3_spill] sm:$0xff] %v2114_v35  ;;  %v2133_v38 = vld [vmem:[%s3058_s5 + $0x1b0] sm:$0xff]  ;;  %v2150_v41 = vld [vmem:[%s3058_s5 + $0x28] sm:$0xff]  ;;  %v2155_v42 = vld [vmem:[%s3058_s5 + $0x120] sm:$0xff] }
  0x19   : > { %1057 = vmatpush.msra.mxu1 %v2035_v23  ;;  %1038 = vmatpush.msra.mxu0 %v2047_v25  ;;  %3113 = vst [vmem:[#allocation4_spill] sm:$0xff] %v2121_v36  ;;  %v2138_v39 = vld [vmem:[%s3058_s5 + $0xb0] sm:$0xff]  ;;  %v2169_v43 = vld [vmem:[%s3058_s5 + $0x1a8] sm:$0xff]  ;;  %v2174_v44 = vld [vmem:[%s3058_s5 + $0x20] sm:$0xff] }
  0x1a   : > { %1098 = vmatpush.msra.mxu3 %v2060_v26  ;;  %1079 = vmatpush.msra.mxu2 %v2072_v28  ;;  %3114 = vst [vmem:[#allocation5_spill] sm:$0xff] %v2126_v37  ;;  %v2179_v45 = vld [vmem:[%s3058_s5 + $0xa8] sm:$0xff]  ;;  %v2186_v46 = vld [vmem:[%s3058_s5 + $0x118] sm:$0xff]  ;;  %v2191_v47 = vld [vmem:[%s3058_s5 + $0x1a0] sm:$0xff] }
  0x1b   : > { %1058 = vmatpush.msra.mxu1 %v2065_v27  ;;  %1039 = vmatpush.msra.mxu0 %v2077_v29  ;;  %3115 = vst [vmem:[#allocation6_spill] sm:$0xff] %v2133_v38  ;;  %v2196_v48 = vld [vmem:[%s3058_s5 + $0x18] sm:$0xff]  ;;  %v2201_v49 = vld [vmem:[%s3058_s5 + $0xa0] sm:$0xff]  ;;  %v2216_v52 = vld [vmem:[%s2162_s21 + $0x10] sm:$0x7f] }
  0x1c   : > { %1099 = vmatpush.msra.mxu3 %v2084_v30  ;;  %1080 = vmatpush.msra.mxu2 %v2096_v32  ;;  %3116 = vst [vmem:[#allocation7_spill] sm:$0xff] %v2138_v39  ;;  %v2208_v50 = vld [vmem:[%s3058_s5 + $0x198] sm:$0xff]  ;;  %v2219_v53 = vld [vmem:[%s2162_s21 + $0x30] sm:$0x7f]  ;;  %v2246_v60 = vld [vmem:[%s3055_s2] sm:$0xf] }
  0x1d   : > { %1059 = vmatpush.msra.mxu1 %v2089_v31  ;;  %1040 = vmatpush.msra.mxu0 %v2101_v33  ;;  %3117 = vst [vmem:[#allocation8_spill] sm:$0xff] %v2145_v40  ;;  %v2213_v51 = vld [vmem:[%s3058_s5 + $0x98] sm:$0xff]  ;;  %v2222_v54 = vld [vmem:[%s2162_s21 + $0x50] sm:$0x7f] }
  0x1e   : > { %1100 = vmatpush.msra.mxu3 %v2109_v34  ;;  %3118 = vst [vmem:[#allocation9_spill] sm:$0xff] %v2150_v41  ;;  %1081 = vmatpush.msra.mxu2 %v2121_v36  ;;  %v2227_v55 = vld [vmem:[%s2162_s21 + $0x70] sm:$0x7f]  ;;  %v2340_v34 = vld [vmem:[%s3058_s5 + $0x180] sm:$0xff] }
  0x1f   : > { %1060 = vmatpush.msra.mxu1 %v2114_v35  ;;  %3119 = vst [vmem:[#allocation10_spill] sm:$0xff] %v2155_v42  ;;  %1041 = vmatpush.msra.mxu0 %v2126_v37  ;;  %v2230_v56 = vld [vmem:[%s2162_s21 + $0x90] sm:$0x7f]  ;;  %v2318_v37 = vld [vmem:[%s3056_s3] sm:$0x7f] }
  0x20   : > { %3120 = vst [vmem:[#allocation11_spill] sm:$0xff] %v2169_v43  ;;  %1101 = vmatpush.msra.mxu3 %v2133_v38  ;;  %1082 = vmatpush.msra.mxu2 %v2145_v40  ;;  %v2233_v57 = vld [vmem:[%s2162_s21 + $0xb0] sm:$0x7f]  ;;  %v2343_v36 = vld [vmem:[%s2162_s21] sm:$0x7f] }
  0x21   : > { %3121 = vst [vmem:[#allocation12_spill] sm:$0xff] %v2174_v44  ;;  %1061 = vmatpush.msra.mxu1 %v2138_v39  ;;  %1042 = vmatpush.msra.mxu0 %v2150_v41  ;;  %v2238_v58 = vld [vmem:[%s2162_s21 + $0xd0] sm:$0x7f]  ;;  %v2296_v39 = vld [vmem:[%s3058_s5 + $0x8] sm:$0xff] }
  0x22   : > { %3122 = vst [vmem:[#allocation13_spill] sm:$0xff] %v2179_v45  ;;  %1102 = vmatpush.msra.mxu3 %v2169_v43  ;;  %1083 = vmatpush.msra.mxu2 %v2155_v42  ;;  %v417_v59 = vld [vmem:[%s3054_s1 + $0x10] sm:$0x7f]  ;;  %v2274_v43 = vld [vmem:[%s3058_s5 + $0x108] sm:$0xff] }
  0x23   : > { %3123 = vst [vmem:[#allocation14_spill] sm:$0xff] %v2186_v46  ;;  %1062 = vmatpush.msra.mxu1 %v2179_v45  ;;  %1043 = vmatpush.msra.mxu0 %v2174_v44  ;;  %v2253_v61 = vld [vmem:[%s3058_s5 + $0x110] sm:$0xff]  ;;  %v421_v63 = vmul.f32 %v417_v59, %v2216_v52  ;;  %v425_v45 = vmul.f32 %v417_v59, %v2219_v53  ;;  %v2301_v41 = vld [vmem:[%s3058_s5 + $0x188] sm:$0xff] }
  0x24   : > { %3124 = vst [vmem:[#allocation15_spill] sm:$0xff] %v2191_v47  ;;  %1103 = vmatpush.msra.mxu3 %v2191_v47  ;;  %v2258_v62 = vld [vmem:[%s3058_s5 + $0x10] sm:$0xff]  ;;  %v429_v44 = vmul.f32 %v417_v59, %v2222_v54  ;;  %v2264_v47 = vperm.slane %v2246_v60, 2  ;;  %1084 = vmatpush.msra.mxu2 %v2186_v46  ;;  %v437_v46 = vmul.f32 %v417_v59, %v2230_v56 }
  0x25   : > { %3125 = vst [vmem:[#allocation16_spill] sm:$0xff] %v2196_v48  ;;  %1063 = vmatpush.msra.mxu1 %v2201_v49  ;;  %1044 = vmatpush.msra.mxu0 %v2196_v48  ;;  %v441_v48 = vmul.f32 %v417_v59, %v2233_v57 }
  0x26   : > { %3126 = vst [vmem:[#allocation17_spill] sm:$0xff] %v2201_v49  ;;  %v683_v49 = vld [vmem:[%s3056_s3 + $0x8] sm:$0x7f]  ;;  %1104 = vmatpush.msra.mxu3 %v2208_v50  ;;  %1085 = vmatpush.msra.mxu2 %v2253_v61 }
  0x27   : > { %3127 = vst [vmem:[#allocation18_spill] sm:$0xff] %v2208_v50  ;;  %v2289_v42 = vrot.slane %v683_v49, 7  ;;  %1064 = vmatpush.msra.mxu1 %v2213_v51  ;;  %v445_v49 = vmul.f32 %v417_v59, %v2238_v58  ;;  %1045 = vmatpush.msra.mxu0 %v2258_v62 }
  0x28   : > { %3128 = vst [vmem:[#allocation19_spill] sm:$0xff] %v2213_v51  ;;  %v518_v51 = vsel %vm3108_vm0, %v429_v44, 0.0  ;;  %v2325_v44 = vld [vmem:[%s3058_s5 + $0x100] sm:$0xff]  ;;  %1086 = vmatpush.msra.mxu2 %v2274_v43 }
  0x29   : > { %3129 = vst [vmem:[#allocation20_spill] sm:$0xff] %v2216_v52  ;;  %v433_v52 = vmul.f32 %v417_v59, %v2227_v55  ;;  %v519_v40 = vrot.slane %v518_v51, 4  ;;  %v574_v59 = vsel %vm3108_vm0, %v437_v46, 0.0  ;;  %1046 = vmatpush.msra.mxu0 %v2296_v39 }
  0x2a   : > { %3130 = vst [vmem:[#allocation21_spill] sm:$0xff] %v2219_v53  ;;  %v2284_v53 = vld [vmem:[%s3058_s5 + $0x90] sm:$0xff]  ;;  %1087 = vmatpush.msra.mxu2 %v2325_v44 }
  0x2b   : > { %3131 = vst [vmem:[#allocation22_spill] sm:$0xff] %v2222_v54  ;;  %v2279_v54 = vld [vmem:[%s3058_s5 + $0x190] sm:$0xff]  ;;  %v546_v35 = vsel %vm3108_vm0, %v433_v52, 0.0  ;;  %1065 = vmatpush.msra.mxu1 %v2284_v53 }
  0x2c   : > { %3132 = vst [vmem:[#allocation23_spill] sm:$0xff] %v2227_v55  ;;  %v490_v55 = vsel %vm3108_vm0, %v425_v45, 0.0  ;;  %1105 = vmatpush.msra.mxu3 %v2279_v54  ;;  %v2330_v45 = vld [vmem:[%s3058_s5] sm:$0xff]  ;;  %v547_v52 = vrot.slane %v546_v35, 4  ;;  %1152 = vmatpush.msrb.mxu2 %v1896_v0 }
  0x2d   : > { %3133 = vst [vmem:[#allocation24_spill] sm:$0xff] %v2230_v56  ;;  %v462_v56 = vsel %vm3108_vm0, %v421_v63, 0.0  ;;  %v491_v38 = vrot.slane %v490_v55, 4  ;;  %v602_v63 = vsel %vm3108_vm0, %v441_v48, 0.0  ;;  %1047 = vmatpush.msra.mxu0 %v2330_v45  ;;  %v2371_v0 = vld [vmem:[%s2162_s21 + $0x40] sm:$0x7f] }
  0x2e   : > { %3134 = vst [vmem:[#allocation25_spill] sm:$0xff] %v2233_v57  ;;  %v2306_v57 = vld [vmem:[%s3058_s5 + $0x88] sm:$0xff]  ;;  %v463_v50 = vrot.slane %v462_v56, 4  ;;  %1106 = vmatpush.msra.mxu3 %v2301_v41  ;;  %v548_v46 = vadd.f32 %v547_v52, %v546_v35  ;;  %v603_v48 = vrot.slane %v602_v63, 4  ;;  %v2360_v35 = vld [vmem:[%s3054_s1] sm:$0x7f]  ;;  %1153 = vmatpush.msrb.mxu2 %v1906_v2 }
  0x2f   : > { %3135 = vst [vmem:[#allocation26_spill] sm:$0xff] %v2238_v58  ;;  %v630_v58 = vsel %vm3108_vm0, %v445_v49, 0.0  ;;  %1066 = vmatpush.msra.mxu1 %v2306_v57  ;;  %1112 = vmatpush.msrb.mxu0 %v1901_v1  ;;  %v2382_v1 = vld [vmem:[%s3058_s5 + $0x80] sm:$0xff] }
  0x30   : > { %3136 = vst [vmem:[#allocation27_spill] sm:$0xff] %v2253_v61  ;;  %v575_v61 = vrot.slane %v574_v59, 4  ;;  %v631_v49 = vrot.slane %v630_v58, 4  ;;  %v549_v52 = vrot.slane %v548_v46, 2  ;;  %1107 = vmatpush.msra.mxu3 %v2340_v34  ;;  %1154 = vmatpush.msrb.mxu2 %v1930_v6 }
  0x31   : > { %3137 = vst [vmem:[#allocation28_spill] sm:$0xff] %v2258_v62  ;;  %v520_v62 = vadd.f32 %v519_v40, %v518_v51  ;;  %v2353_v40 = vld [vmem:[%s2162_s21 + $0x20] sm:$0x7f]  ;;  %1113 = vmatpush.msrb.mxu0 %v1918_v4  ;;  %1067 = vmatpush.msra.mxu1 %v2382_v1 }
  0x32   : > { %3138 = vst [vmem:[#allocation29_spill] sm:$0xff] %v2279_v54  ;;  %v492_v54 = vadd.f32 %v491_v38, %v490_v55  ;;  %v2350_v38 = vsel %vm699_vm1, %v2318_v37, %v2289_v42  ;;  %1172 = vmatpush.msrb.mxu3 %v1913_v3  ;;  %v2391_v4 = vld [vmem:[%s2162_s21 + $0x80] sm:$0x7f]  ;;  %1155 = vmatpush.msrb.mxu2 %v1959_v11 }
  0x33   : > { %3139 = vst [vmem:[#allocation30_spill] sm:$0xff] %v2284_v53  ;;  %v464_v53 = vadd.f32 %v463_v50, %v462_v56  ;;  %v521_v55 = vrot.slane %v520_v62, 2  ;;  %v576_v56 = vadd.f32 %v575_v61, %v574_v59  ;;  %v550_v59 = vadd.f32 %v549_v52, %v548_v46  ;;  %1132 = vmatpush.msrb.mxu1 %v1923_v5 }
  0x34   : > { %3140 = vst [vmem:[#allocation31_spill] sm:$0xff] %v2289_v42  ;;  %v493_v51 = vrot.slane %v492_v54, 2  ;;  %v2366_v42 = vmul.f32 %v2360_v35, %v2343_v36  ;;  %1173 = vmatpush.msrb.mxu3 %v1935_v7  ;;  %1114 = vmatpush.msrb.mxu0 %v1940_v8  ;;  %v2406_v8 = vld [vmem:[%s2162_s21 + $0xc0] sm:$0x7f]  ;;  %v435_v11 = vmul.f32 %v2360_v35, %v2391_v4 }
  0x35   : > { %3141 = vst [vmem:[#allocation32_spill] sm:$0xff] %v2301_v41  ;;  %v465_v50 = vrot.slane %v464_v53, 2  ;;  %v522_v41 = vadd.f32 %v521_v55, %v520_v62  ;;  %v577_v61 = vrot.slane %v576_v56, 2  ;;  %v551_v2 = vrot.slane %v550_v59, 1  ;;  %1133 = vmatpush.msrb.mxu1 %v1947_v9  ;;  %1156 = vmatpush.msrb.mxu2 %v1988_v16 }
  0x36   : > { %3142 = vst [vmem:[#allocation33_spill] sm:$0xff] %v2306_v57  ;;  %1174 = vmatpush.msrb.mxu3 %v1952_v10  ;;  %1115 = vmatpush.msrb.mxu0 %v1964_v12 }
  0x37   : > { %3143 = vst [vmem:[#allocation34_spill] sm:$0xff] %v2318_v37  ;;  %v632_v37 = vadd.f32 %v631_v49, %v630_v58  ;;  %v466_v57 = vadd.f32 %v465_v50, %v464_v53  ;;  %v423_v53 = vmul.f32 %v2360_v35, %v2353_v40  ;;  %v578_v49 = vadd.f32 %v577_v61, %v576_v56  ;;  %v2377_v50 = vld [vmem:[%s2162_s21 + $0x60] sm:$0x7f] }
  0x38   : > { %3144 = vst [vmem:[#allocation35_spill] sm:$0xff] %v2330_v45  ;;  %v494_v45 = vadd.f32 %v493_v51, %v492_v54  ;;  %v427_v51 = vmul.f32 %v2360_v35, %v2371_v0  ;;  %v552_v7 = vadd.f32 %v551_v2, %v550_v59  ;;  %v431_v6 = vmul.f32 %v2360_v35, %v2377_v50 }
  0x39   : > { %3145 = vst [vmem:[#allocation36_spill] sm:$0xff] %v2350_v38  ;;  %v604_v38 = vadd.f32 %v603_v48, %v602_v63  ;;  %v633_v63 = vrot.slane %v632_v37, 2  ;;  %v467_v54 = vrot.slane %v466_v57, 1  ;;  %v523_v48 = vrot.slane %v522_v41, 1  ;;  %1134 = vmatpush.msrb.mxu1 %v1969_v13  ;;  %1175 = vmatpush.msrb.mxu3 %v1976_v14 }
  0x3a   : > { %v495_v62 = vrot.slane %v494_v45, 1  ;;  %v579_v61 = vrot.slane %v578_v49, 1  ;;  %1116 = vmatpush.msrb.mxu0 %v1993_v17  ;;  %v448_v13 = vsel %vm3108_vm0, %v2366_v42, 0.0  ;;  %v476_v16 = vsel %vm3108_vm0, %v423_v53, 0.0  ;;  %1157 = vmatpush.msrb.mxu2 %v2018_v20 }
  0x3b   : > { %v605_v58 = vrot.slane %v604_v38, 2  ;;  %v634_v46 = vadd.f32 %v633_v63, %v632_v37  ;;  %v468_v55 = vadd.f32 %v467_v54, %v466_v57  ;;  %v524_v52 = vadd.f32 %v523_v48, %v522_v41  ;;  %1135 = vmatpush.msrb.mxu1 %v1981_v15  ;;  %1176 = vmatpush.msrb.mxu3 %v2006_v18 }
  0x3c   : > { %v496_v56 = vadd.f32 %v495_v62, %v494_v45  ;;  %v580_v41 = vadd.f32 %v579_v61, %v578_v49  ;;  %v668_v54 = vadd.f32 %v2264_v47, %v552_v7  ;;  %1117 = vmatpush.msrb.mxu0 %v2023_v21  ;;  %v477_v17 = vrot.slane %v476_v16, 4  ;;  %1158 = vmatpush.msrb.mxu2 %v2042_v24 }
  0x3d   : > { %v606_v3 = vadd.f32 %v605_v58, %v604_v38  ;;  %v635_v38 = vrot.slane %v634_v46, 1  ;;  %v2396_v58 = vld [vmem:[%s2162_s21 + $0xa0] sm:$0x7f]  ;;  %v656_v57 = vadd.f32 %v2264_v47, %v468_v55  ;;  %v664_v5 = vadd.f32 %v2264_v47, %v524_v52  ;;  %1136 = vmatpush.msrb.mxu1 %v2011_v19  ;;  %1177 = vmatpush.msrb.mxu3 %v2030_v22 }
  0x3e   : > { %v660_v45 = vadd.f32 %v2264_v47, %v496_v56  ;;  %v672_v10 = vadd.f32 %v2264_v47, %v580_v41  ;;  %v439_v49 = vmul.f32 %v2360_v35, %v2396_v58  ;;  %v449_v52 = vrot.slane %v448_v13, 4  ;;  %1118 = vmatpush.msrb.mxu0 %v2047_v25  ;;  %1159 = vmatpush.msrb.mxu2 %v2072_v28 }
  0x3f   : > { %v607_v37 = vrot.slane %v606_v3, 1  ;;  %v636_v63 = vadd.f32 %v635_v38, %v634_v46  ;;  %v1006_v48 = vrot.slane %v664_v5, 6  ;;  %v443_v46 = vmul.f32 %v2360_v35, %v2406_v8  ;;  %1137 = vmatpush.msrb.mxu1 %v2035_v23  ;;  %1178 = vmatpush.msrb.mxu3 %v2060_v26 }
  0x40   : > { %v1004_v62 = vrot.slane %v660_v45, 7  ;;  %v1010_v55 = vrot.slane %v672_v10, 4  ;;  %v504_v42 = vsel %vm3108_vm0, %v427_v51, 0.0  ;;  %v532_v53 = vsel %vm3108_vm0, %v431_v6, 0.0  ;;  %1119 = vmatpush.msrb.mxu0 %v2077_v29  ;;  %1160 = vmatpush.msrb.mxu2 %v2096_v32  ;;  %v3146_v32 = vld [vmem:[#allocation4_spill] sm:$0xff] }
  0x41   : > { %v608_v59 = vadd.f32 %v607_v37, %v606_v3  ;;  %v680_v2 = vadd.f32 %v2264_v47, %v636_v63  ;;  %v1008_v3 = vrot.slane %v668_v54, 5  ;;  %v450_v20 = vadd.f32 %v449_v52, %v448_v13  ;;  %1138 = vmatpush.msrb.mxu1 %v2065_v27  ;;  %1179 = vmatpush.msrb.mxu3 %v2084_v30  ;;  %v418_v30 = vld [vmem:[%s3054_s1 + $0x18] sm:$0x7f] }
  0x42   : > { %v1005_v12 = vsel %vm699_vm1, %v1004_v62, %v656_v57  ;;  %v505_v61 = vrot.slane %v504_v42, 4  ;;  %v533_v7 = vrot.slane %v532_v53, 4  ;;  %v478_v21 = vadd.f32 %v477_v17, %v476_v16  ;;  %1120 = vmatpush.msrb.mxu0 %v2101_v33  ;;  %1161 = vmatpush.msrb.mxu2 %v3146_v32 }
  0x43   : > { %v676_v9 = vadd.f32 %v2264_v47, %v608_v59  ;;  %v1007_v47 = vsel %vm695_vm2, %v1006_v48, %v1005_v12  ;;  %v1014_v35 = vrot.slane %v680_v2, 2  ;;  %v560_v51 = vsel %vm3108_vm0, %v435_v11, 0.0  ;;  %v2452_v59 = vld [vmem:[%s2162_s21 + $0x18] sm:$0x7f]  ;;  %1139 = vmatpush.msrb.mxu1 %v2089_v31 }
  0x44   : > { %v1009_v14 = vsel %vm701_vm3, %v1008_v3, %v1007_v47  ;;  %v588_v37 = vsel %vm3108_vm0, %v439_v49, 0.0  ;;  %v451_v24 = vrot.slane %v450_v20, 2  ;;  %v506_v38 = vadd.f32 %v505_v61, %v504_v42  ;;  %v2462_v48 = vld [vmem:[%s2162_s21 + $0x38] sm:$0x7f]  ;;  %v3147_v49 = vld [vmem:[#allocation2_spill] sm:$0xff] }
  0x45   : > { %v1012_v56 = vrot.slane %v676_v9, 3  ;;  %v1011_v15 = vsel %vm707_vm4, %v1010_v55, %v1009_v14  ;;  %v534_v6 = vadd.f32 %v533_v7, %v532_v53  ;;  %v479_v22 = vrot.slane %v478_v21, 2  ;;  %1180 = vmatpush.msrb.mxu3 %v3147_v49  ;;  %v3148_v3 = vld [vmem:[#allocation5_spill] sm:$0xff] }
  0x46   : > { %v561_v25 = vrot.slane %v560_v51, 4  ;;  %v589_v41 = vrot.slane %v588_v37, 4  ;;  %v616_v57 = vsel %vm3108_vm0, %v443_v46, 0.0  ;;  %v452_v23 = vadd.f32 %v451_v24, %v450_v20  ;;  %1121 = vmatpush.msrb.mxu0 %v3148_v3  ;;  %v3149_v46 = vld [vmem:[#allocation3_spill] sm:$0xff]  ;;  %v2473_v47 = vld [vmem:[%s2162_s21 + $0x58] sm:$0x7f] }
  0x47   : > { %v1013_v18 = vsel %vm713_vm5, %v1012_v56, %v1011_v15  ;;  %v507_v28 = vrot.slane %v506_v38, 2  ;;  %v535_v45 = vrot.slane %v534_v6, 2  ;;  %v617_v5 = vrot.slane %v616_v57, 4  ;;  %1140 = vmatpush.msrb.mxu1 %v3149_v46  ;;  %v3150_v56 = vld [vmem:[#allocation8_spill] sm:$0xff]  ;;  %v2478_v42 = vld [vmem:[%s2162_s21 + $0x78] sm:$0x7f] }
  0x48   : > { %v1015_v19 = vsel %vm719_vm6, %v1014_v35, %v1013_v18  ;;  %v480_v26 = vadd.f32 %v479_v22, %v478_v21  ;;  %v562_v29 = vadd.f32 %v561_v25, %v560_v51  ;;  %v590_v63 = vadd.f32 %v589_v41, %v588_v37  ;;  %1162 = vmatpush.msrb.mxu2 %v3150_v56  ;;  %v3151_v35 = vld [vmem:[#allocation6_spill] sm:$0xff]  ;;  %v3152_v15 = vld [vmem:[#allocation9_spill] sm:$0xff]  ;;  %v3153_v51 = vld [vmem:[#allocation7_spill] sm:$0xff] }
  0x49   : > { %1088 = vmatmul.f32.vlgmr.msra.gmra.mxu2 %v1015_v19  ;;  %v2457_v54 = vperm.slane %v2246_v60, 0  ;;  %v453_v27 = vrot.slane %v452_v23, 1  ;;  %v508_v11 = vadd.f32 %v507_v28, %v506_v38  ;;  %v536_v10 = vadd.f32 %v535_v45, %v534_v6  ;;  %1181 = vmatpush.msrb.mxu3 %v3151_v35  ;;  %v2484_v21 = vld [vmem:[%s2162_s21 + $0x98] sm:$0x7f]  ;;  %v3154_v22 = vld [vmem:[#allocation10_spill] sm:$0xff]  ;;  %v3155_v25 = vld [vmem:[#allocation11_spill] sm:$0xff] }
  0x4a   : > { %v618_v62 = vadd.f32 %v617_v5, %v616_v57  ;;  %v481_v9 = vrot.slane %v480_v26, 1  ;;  %v563_v33 = vrot.slane %v562_v29, 2  ;;  %v591_v2 = vrot.slane %v590_v63, 2  ;;  %1122 = vmatpush.msrb.mxu0 %v3152_v15  ;;  %1141 = vmatpush.msrb.mxu1 %v3153_v51  ;;  %v2489_v38 = vld [vmem:[%s2162_s21 + $0xb8] sm:$0x7f]  ;;  %v3156_v5 = vld [vmem:[#allocation12_spill] sm:$0xff] }
  0x4b   : > { %v422_v31 = vmul.f32 %v418_v30, %v2452_v59  ;;  %v454_v12 = vadd.f32 %v453_v27, %v452_v23  ;;  %v509_v55 = vrot.slane %v508_v11, 1  ;;  %v537_v13 = vrot.slane %v536_v10, 1  ;;  %1163 = vmatpush.msrb.mxu2 %v3154_v22  ;;  %1182 = vmatpush.msrb.mxu3 %v3155_v25  ;;  %v2497_v28 = vld [vmem:[%s2162_s21 + $0xd8] sm:$0x7f]  ;;  %v3164_v15 = vld [vmem:[#allocation28_spill] sm:$0xff] }
  0x4c   : > { %v619_v16 = vrot.slane %v618_v62, 2  ;;  %v482_v52 = vadd.f32 %v481_v9, %v480_v26  ;;  %v564_v14 = vadd.f32 %v563_v33, %v562_v29  ;;  %v592_v17 = vadd.f32 %v591_v2, %v590_v63  ;;  %1123 = vmatpush.msrb.mxu0 %v3156_v5  ;;  %v3157_v26 = vld [vmem:[#allocation13_spill] sm:$0xff]  ;;  %v3160_v2 = vld [vmem:[#allocation16_spill] sm:$0xff]  ;;  %v3169_v5 = vld [vmem:[#allocation35_spill] sm:$0xff] }
  0x4d   : > { %v426_v53 = vmul.f32 %v418_v30, %v2462_v48  ;;  %v510_v20 = vadd.f32 %v509_v55, %v508_v11  ;;  %v538_v61 = vadd.f32 %v537_v13, %v536_v10  ;;  %v654_v18 = vadd.f32 %v2457_v54, %v454_v12  ;;  %1142 = vmatpush.msrb.mxu1 %v3157_v26  ;;  %v3158_v10 = vld [vmem:[#allocation14_spill] sm:$0xff]  ;;  %v3161_v3 = vld [vmem:[#allocation17_spill] sm:$0xff] }
  0x4e   : > { %v620_v7 = vadd.f32 %v619_v16, %v618_v62  ;;  %v565_v37 = vrot.slane %v564_v14, 1  ;;  %v593_v19 = vrot.slane %v592_v17, 1  ;;  %v658_v24 = vadd.f32 %v2457_v54, %v482_v52  ;;  %1164 = vmatpush.msrb.mxu2 %v3158_v10  ;;  %v3159_v62 = vld [vmem:[#allocation15_spill] sm:$0xff]  ;;  %1124 = vmatpush.msrb.mxu0 %v3160_v2 }
  0x4f   : > { %v430_v6 = vmul.f32 %v418_v30, %v2473_v47  ;;  %v662_v57 = vadd.f32 %v2457_v54, %v510_v20  ;;  %v666_v23 = vadd.f32 %v2457_v54, %v538_v61  ;;  %v434_v45 = vmul.f32 %v418_v30, %v2478_v42  ;;  %1183 = vmatpush.msrb.mxu3 %v3159_v62  ;;  %v3162_v16 = vld [vmem:[#allocation27_spill] sm:$0xff] }
  0x50   : > { %v621_v41 = vrot.slane %v620_v7, 1  ;;  %v566_v29 = vadd.f32 %v565_v37, %v564_v14  ;;  %v594_v63 = vadd.f32 %v593_v19, %v592_v17  ;;  %v980_v27 = vrot.slane %v658_v24, 7  ;;  %1143 = vmatpush.msrb.mxu1 %v3161_v3  ;;  %1165 = vmatpush.msrb.mxu2 %v3162_v16  ;;  %v3163_v17 = vld [vmem:[#allocation18_spill] sm:$0xff]  ;;  %v2539_v2 = vld [vmem:[%s2162_s21 + $0x8] sm:$0x7f] }
  0x51   : > { %v438_v11 = vmul.f32 %v418_v30, %v2484_v21  ;;  %v982_v49 = vrot.slane %v662_v57, 6  ;;  %v984_v9 = vrot.slane %v666_v23, 5  ;;  %v442_v33 = vmul.f32 %v418_v30, %v2489_v38  ;;  %1184 = vmatpush.msrb.mxu3 %v3163_v17  ;;  %1125 = vmatpush.msrb.mxu0 %v3164_v15 }
  0x52   : > { %v622_v32 = vadd.f32 %v621_v41, %v620_v7  ;;  %v670_v46 = vadd.f32 %v2457_v54, %v566_v29  ;;  %v674_v12 = vadd.f32 %v2457_v54, %v594_v63  ;;  %v981_v55 = vsel %vm699_vm1, %v980_v27, %v654_v18  ;;  %1166 = vmatpush.msrb.mxu2 %v2274_v43  ;;  %v3167_v41 = vld [vmem:[#allocation30_spill] sm:$0xff]  ;;  %v3170_v27 = vld [vmem:[#allocation33_spill] sm:$0xff] }
  0x53   : > { %v446_v13 = vmul.f32 %v418_v30, %v2497_v28  ;;  %v983_v35 = vsel %vm695_vm2, %v982_v49, %v981_v55  ;;  %v469_v52 = vsel %vm3108_vm0, %v422_v31, 0.0  ;;  %v497_v14 = vsel %vm3108_vm0, %v426_v53, 0.0  ;;  %v3165_v30 = vld [vmem:[#allocation19_spill] sm:$0xff]  ;;  %v3166_v53 = vld [vmem:[#allocation29_spill] sm:$0xff]  ;;  %1126 = vmatpush.msrb.mxu0 %v2296_v39 }
  0x54   : > { %v678_v56 = vadd.f32 %v2457_v54, %v622_v32  ;;  %v985_v20 = vsel %vm701_vm3, %v984_v9, %v983_v35  ;;  %v986_v61 = vrot.slane %v670_v46, 4  ;;  %v988_v7 = vrot.slane %v674_v12, 3  ;;  %1144 = vmatpush.msrb.mxu1 %v3165_v30  ;;  %1185 = vmatpush.msrb.mxu3 %v3166_v53  ;;  %v2551_v30 = vld [vmem:[%s2162_s21 + $0x48] sm:$0x7f] }
  0x55   : > { %v470_v18 = vrot.slane %v469_v52, 4  ;;  %v498_v51 = vrot.slane %v497_v14, 4  ;;  %v525_v37 = vsel %vm3108_vm0, %v430_v6, 0.0  ;;  %v553_v31 = vsel %vm3108_vm0, %v434_v45, 0.0  ;;  %1167 = vmatpush.msrb.mxu2 %v2325_v44  ;;  %v3168_v45 = vld [vmem:[#allocation32_spill] sm:$0xff]  ;;  %1127 = vmatpush.msrb.mxu0 %v3169_v5 }
  0x56   : > { %v990_v54 = vrot.slane %v678_v56, 2  ;;  %v987_v19 = vsel %vm707_vm4, %v986_v61, %v985_v20  ;;  %v526_v22 = vrot.slane %v525_v37, 4  ;;  %v554_v25 = vrot.slane %v553_v31, 4  ;;  %1145 = vmatpush.msrb.mxu1 %v3167_v41  ;;  %1186 = vmatpush.msrb.mxu3 %v3168_v45  ;;  %v2558_v41 = vld [vmem:[%s2162_s21 + $0x88] sm:$0x7f] }
  0x57   : > { %v471_v24 = vadd.f32 %v470_v18, %v469_v52  ;;  %v989_v43 = vsel %vm713_vm5, %v988_v7, %v987_v19  ;;  %v499_v57 = vadd.f32 %v498_v51, %v497_v14  ;;  %v581_v6 = vsel %vm3108_vm0, %v438_v11, 0.0  ;;  %v416_v52 = vld [vmem:[%s3054_s1 + $0x8] sm:$0x7f] }
  0x58   : > { %v609_v23 = vsel %vm3108_vm0, %v442_v33, 0.0  ;;  %v991_v39 = vsel %vm719_vm6, %v990_v54, %v989_v43  ;;  %v527_v29 = vadd.f32 %v526_v22, %v525_v37  ;;  %v555_v63 = vadd.f32 %v554_v25, %v553_v31  ;;  %1146 = vmatpush.msrb.mxu1 %v3170_v27  ;;  %1187 = vmatpush.msrb.mxu3 %v2340_v34  ;;  %v2544_v34 = vld [vmem:[%s2162_s21 + $0x28] sm:$0x7f] }
  0x59   : > { %v472_v26 = vrot.slane %v471_v24, 2  ;;  %1048 = vmatmul.f32.vlgmr.msra.gmra.mxu0 %v991_v39  ;;  %v500_v44 = vrot.slane %v499_v57, 2  ;;  %v582_v10 = vrot.slane %v581_v6, 4  ;;  %v610_v62 = vrot.slane %v609_v23, 4  ;;  %v2554_v31 = vld [vmem:[%s2162_s21 + $0x68] sm:$0x7f] }
  0x5a   : > { %v637_v11 = vsel %vm3108_vm0, %v446_v13, 0.0  ;;  %v528_v49 = vrot.slane %v527_v29, 2  ;;  %v556_v9 = vrot.slane %v555_v63, 2  ;;  %1147 = vmatpush.msrb.mxu1 %v2382_v1  ;;  %v649_v55 = vperm.slane %v2246_v60, 3 }
  0x5b   : > { %v473_v32 = vadd.f32 %v472_v26, %v471_v24  ;;  %v638_v33 = vrot.slane %v637_v11, 4  ;;  %v501_v3 = vadd.f32 %v500_v44, %v499_v57  ;;  %v583_v46 = vadd.f32 %v582_v10, %v581_v6 }
  0x5c   : > { %v611_v12 = vadd.f32 %v610_v62, %v609_v23  ;;  %v529_v56 = vadd.f32 %v528_v49, %v527_v29  ;;  %v557_v13 = vadd.f32 %v556_v9, %v555_v63  ;;  %v420_v15 = vmul.f32 %v416_v52, %v2539_v2  ;;  %v2561_v23 = vld [vmem:[%s2162_s21 + $0xa8] sm:$0x7f] }
  0x5d   : > { %v474_v16 = vrot.slane %v473_v32, 1  ;;  %v639_v35 = vadd.f32 %v638_v33, %v637_v11  ;;  %v502_v14 = vrot.slane %v501_v3, 1  ;;  %v584_v17 = vrot.slane %v583_v46, 2  ;;  %v2565_v29 = vld [vmem:[%s2162_s21 + $0xc8] sm:$0x7f] }
  0x5e   : > { %v612_v1 = vrot.slane %v611_v12, 2  ;;  %v530_v61 = vrot.slane %v529_v56, 1  ;;  %v558_v7 = vrot.slane %v557_v13, 1  ;;  %v424_v53 = vmul.f32 %v416_v52, %v2544_v34 }
  0x5f   : > { %v475_v20 = vadd.f32 %v474_v16, %v473_v32  ;;  %v640_v18 = vrot.slane %v639_v35, 2  ;;  %v503_v54 = vadd.f32 %v502_v14, %v501_v3  ;;  %v585_v51 = vadd.f32 %v584_v17, %v583_v46 }
  0x60   : > { %v613_v37 = vadd.f32 %v612_v1, %v611_v12  ;;  %v531_v19 = vadd.f32 %v530_v61, %v529_v56  ;;  %v559_v24 = vadd.f32 %v558_v7, %v557_v13  ;;  %v428_v45 = vmul.f32 %v416_v52, %v2551_v30 }
  0x61   : > { %v641_v22 = vadd.f32 %v640_v18, %v639_v35  ;;  %v657_v25 = vadd.f32 %v649_v55, %v475_v20  ;;  %v586_v43 = vrot.slane %v585_v51, 1  ;;  %v661_v6 = vadd.f32 %v649_v55, %v503_v54 }
  0x62   : > { %v614_v57 = vrot.slane %v613_v37, 1  ;;  %v665_v39 = vadd.f32 %v649_v55, %v531_v19  ;;  %v669_v26 = vadd.f32 %v649_v55, %v559_v24  ;;  %v432_v63 = vmul.f32 %v416_v52, %v2554_v31 }
  0x63   : > { %v642_v5 = vrot.slane %v641_v22, 1  ;;  %v587_v27 = vadd.f32 %v586_v43, %v585_v51  ;;  %v1016_v10 = vrot.slane %v661_v6, 7  ;;  %v436_v62 = vmul.f32 %v416_v52, %v2558_v41 }
  0x64   : > { %v615_v44 = vadd.f32 %v614_v57, %v613_v37  ;;  %v1018_v32 = vrot.slane %v665_v39, 6  ;;  %v1020_v49 = vrot.slane %v669_v26, 5  ;;  %v440_v9 = vmul.f32 %v416_v52, %v2561_v23 }
  0x65   : > { %v643_v11 = vadd.f32 %v642_v5, %v641_v22  ;;  %v673_v33 = vadd.f32 %v649_v55, %v587_v27  ;;  %v1017_v46 = vsel %vm699_vm1, %v1016_v10, %v657_v25  ;;  %v444_v12 = vmul.f32 %v416_v52, %v2565_v29  ;;  %v684_v10 = vld [vmem:[%s3056_s3 + $0x10] sm:$0x7f] }
  0x66   : > { %v677_v3 = vadd.f32 %v649_v55, %v615_v44  ;;  %v1019_v56 = vsel %vm695_vm2, %v1018_v32, %v1017_v46  ;;  %v455_v13 = vsel %vm3108_vm0, %v420_v15, 0.0  ;;  %v483_v35 = vsel %vm3108_vm0, %v424_v53, 0.0 }
  0x67   : > { %v681_v16 = vadd.f32 %v649_v55, %v643_v11  ;;  %v1021_v14 = vsel %vm701_vm3, %v1020_v49, %v1019_v56  ;;  %v1022_v17 = vrot.slane %v673_v33, 4  ;;  %v456_v20 = vrot.slane %v455_v13, 4 }
  0x68   : > { %v1024_v1 = vrot.slane %v677_v3, 3  ;;  %v484_v7 = vrot.slane %v483_v35, 4  ;;  %v511_v18 = vsel %vm3108_vm0, %v428_v45, 0.0  ;;  %v539_v54 = vsel %vm3108_vm0, %v432_v63, 0.0 }
  0x69   : > { %v1026_v61 = vrot.slane %v681_v16, 2  ;;  %v1023_v52 = vsel %vm707_vm4, %v1022_v17, %v1021_v14  ;;  %v457_v55 = vadd.f32 %v456_v20, %v455_v13  ;;  %v512_v51 = vrot.slane %v511_v18, 4 }
  0x6a   : > { %v540_v37 = vrot.slane %v539_v54, 4  ;;  %v1025_v15 = vsel %vm713_vm5, %v1024_v1, %v1023_v52  ;;  %v485_v19 = vadd.f32 %v484_v7, %v483_v35  ;;  %v567_v53 = vsel %vm3108_vm0, %v436_v62, 0.0 }
  0x6b   : > { %v595_v24 = vsel %vm3108_vm0, %v440_v9, 0.0  ;;  %v1027_v22 = vsel %vm719_vm6, %v1026_v61, %v1025_v15  ;;  %v458_v25 = vrot.slane %v457_v55, 2  ;;  %v513_v43 = vadd.f32 %v512_v51, %v511_v18 }
  0x6c   : > { %v541_v57 = vadd.f32 %v540_v37, %v539_v54  ;;  %1108 = vmatmul.f32.vlgmr.msra.gmra.mxu3 %v1027_v22  ;;  %v486_v6 = vrot.slane %v485_v19, 2  ;;  %v568_v45 = vrot.slane %v567_v53, 4  ;;  %v596_v5 = vrot.slane %v595_v24, 4 }
  0x6d   : > { %v623_v39 = vsel %vm3108_vm0, %v444_v12, 0.0  ;;  %v459_v26 = vadd.f32 %v458_v25, %v457_v55  ;;  %v514_v63 = vrot.slane %v513_v43, 2  ;;  %v647_v49 = vperm.slane %v2246_v60, 1  ;;  %v685_v12 = vld [vmem:[%s3056_s3 + $0x18] sm:$0x7f]  ;;  %v3171_v25 = vld [vmem:[#allocation31_spill] sm:$0xff] }
  0x6e   : > { %v542_v27 = vrot.slane %v541_v57, 2  ;;  %v624_v44 = vrot.slane %v623_v39, 4  ;;  %v487_v62 = vadd.f32 %v486_v6, %v485_v19  ;;  %v569_v11 = vadd.f32 %v568_v45, %v567_v53 }
  0x6f   : > { %v597_v32 = vadd.f32 %v596_v5, %v595_v24  ;;  %v460_v9 = vrot.slane %v459_v26, 1  ;;  %v515_v33 = vadd.f32 %v514_v63, %v513_v43  ;;  %v2591_v35 = vrot.slane %v684_v10, 6  ;;  %v3172_v43 = vld [vmem:[#allocation34_spill] sm:$0xff] }
  0x70   : > { %v543_v3 = vadd.f32 %v542_v27, %v541_v57  ;;  %v625_v46 = vadd.f32 %v624_v44, %v623_v39  ;;  %v488_v16 = vrot.slane %v487_v62, 1  ;;  %v570_v56 = vrot.slane %v569_v11, 2 }
  0x71   : > { %v598_v13 = vrot.slane %v597_v32, 2  ;;  %v461_v14 = vadd.f32 %v460_v9, %v459_v26  ;;  %v516_v17 = vrot.slane %v515_v33, 1  ;;  %v692_v18 = vrot.slane %v685_v12, 5 }
  0x72   : > { %v544_v1 = vrot.slane %v543_v3, 1  ;;  %v626_v20 = vrot.slane %v625_v46, 2  ;;  %v489_v61 = vadd.f32 %v488_v16, %v487_v62  ;;  %v571_v7 = vadd.f32 %v570_v56, %v569_v11  ;;  %v3173_v16 = vld [vmem:[#allocation36_spill] sm:$0xff] }
  0x73   : > { %v599_v60 = vadd.f32 %v598_v13, %v597_v32  ;;  %v517_v54 = vadd.f32 %v516_v17, %v515_v33  ;;  %v655_v51 = vadd.f32 %v647_v49, %v461_v14  ;;  %v694_v57 = vsel %vm3107_vm7, %v3172_v43, %v3171_v25 }
  0x74   : > { %v545_v52 = vadd.f32 %v544_v1, %v543_v3  ;;  %v627_v55 = vadd.f32 %v626_v20, %v625_v46  ;;  %v572_v37 = vrot.slane %v571_v7, 1  ;;  %v659_v19 = vadd.f32 %v647_v49, %v489_v61 }
  0x75   : > { %v600_v15 = vrot.slane %v599_v60, 1  ;;  %v663_v24 = vadd.f32 %v647_v49, %v517_v54  ;;  %v696_v39 = vsel %vm695_vm2, %v2591_v35, %v692_v18  ;;  %v702_v33 = vsel %vm701_vm3, %v2591_v35, %v692_v18 }
  0x76   : > { %v628_v53 = vrot.slane %v627_v55, 1  ;;  %v667_v22 = vadd.f32 %v647_v49, %v545_v52  ;;  %v573_v6 = vadd.f32 %v572_v37, %v571_v7  ;;  %v992_v5 = vrot.slane %v659_v19, 7 }
  0x77   : > { %v601_v45 = vadd.f32 %v600_v15, %v599_v60  ;;  %v994_v63 = vrot.slane %v663_v24, 6  ;;  %v2600_v11 = vsel %vm3103_vm8, %v694_v57, %v696_v39  ;;  %v704_v56 = vsel %vm3109_vm9, %v3173_v16, %v702_v33  ;;  %v3178_v16 = vld [vmem:[#allocation24_spill] sm:$0xff] }
  0x78   : > { %v629_v26 = vadd.f32 %v628_v53, %v627_v55  ;;  %v996_v27 = vrot.slane %v667_v22, 5  ;;  %v671_v44 = vadd.f32 %v647_v49, %v573_v6  ;;  %v993_v62 = vsel %vm699_vm1, %v992_v5, %v655_v51 }
  0x79   : > { %v675_v10 = vadd.f32 %v647_v49, %v601_v45  ;;  %v995_v9 = vsel %vm695_vm2, %v994_v63, %v993_v62  ;;  %v2608_v14 = vrot.slane %v704_v56, 1  ;;  %v708_v17 = vsel %vm707_vm4, %v2591_v35, %v692_v18  ;;  %v3175_v62 = vld [vmem:[#allocation21_spill] sm:$0xff] }
  0x7a   : > { %v679_v32 = vadd.f32 %v647_v49, %v629_v26  ;;  %v997_v3 = vsel %vm701_vm3, %v996_v27, %v995_v9  ;;  %v998_v46 = vrot.slane %v671_v44, 4  ;;  %v706_v49 = vsel %vm695_vm2, %v3172_v43, %v3171_v25  ;;  %v3176_v9 = vld [vmem:[#allocation22_spill] sm:$0xff] }
  0x7b   : > { %v1000_v12 = vrot.slane %v675_v10, 3  ;;  %v712_v20 = vsel %vm701_vm3, %v3172_v43, %v3171_v25  ;;  %v714_v61 = vsel %vm713_vm5, %v2591_v35, %v692_v18  ;;  %v710_v60 = vsel %vm3106_vm10, %v706_v49, %v708_v17 }
  0x7c   : > { %v1002_v13 = vrot.slane %v679_v32, 2  ;;  %v999_v1 = vsel %vm707_vm4, %v998_v46, %v997_v3  ;;  %v718_v54 = vsel %vm707_vm4, %v3172_v43, %v3171_v25  ;;  %v2627_v55 = vrot.slane %v710_v60, 2  ;;  %v3177_v46 = vld [vmem:[#allocation23_spill] sm:$0xff] }
  0x7d   : > { %v1001_v7 = vsel %vm713_vm5, %v1000_v12, %v999_v1  ;;  %v716_v51 = vsel %vm3105_vm11, %v712_v20, %v714_v61  ;;  %v720_v37 = vsel %vm719_vm6, %v2591_v35, %v692_v18  ;;  %v724_v19 = vsel %vm713_vm5, %v3172_v43, %v3171_v25  ;;  %v3179_v20 = vld [vmem:[#allocation25_spill] sm:$0xff] }
  0x7e   : > { %v1003_v52 = vsel %vm719_vm6, %v1002_v13, %v1001_v7  ;;  %v2632_v15 = vrot.slane %v716_v51, 3  ;;  %v725_v53 = vsel %vm3108_vm0, %v692_v18, %v2591_v35  ;;  %v722_v24 = vsel %vm3104_vm12, %v718_v54, %v720_v37  ;;  %v3180_v7 = vld [vmem:[#allocation26_spill] sm:$0xff] }
  0x7f   : > { %1068 = vmatmul.f32.vlgmr.msra.gmra.mxu1 %v1003_v52  ;;  %v729_v22 = vsel %vm719_vm6, %v3172_v43, %v3171_v25  ;;  %v730_v57 = vsel %vm3107_vm7, %v2591_v35, %v692_v18  ;;  %v2645_v6 = vrot.slane %v722_v24, 4  ;;  %v727_v45 = vsel %vm3102_vm13, %v724_v19, %v725_v53  ;;  %v3174_v18 = vld [vmem:[#allocation20_spill] sm:$0xff]  ;;  %v2675_v51 = vld [vmem:[%s3057_s4] sm:$0xf] }
  0x80   : > { %v736_v5 = vperm.slane %v2600_v11, 2  ;;  %v2649_v39 = vrot.slane %v727_v45, 5  ;;  %v732_v26 = vsel %vm3101_vm14, %v730_v57, %v729_v22  ;;  %v740_v63 = vperm.slane %v2608_v14, 2 }
  0x81   : > { %v744_v27 = vperm.slane %v2627_v55, 2  ;;  %v2654_v44 = vrot.slane %v732_v26, 6  ;;  %v748_v25 = vperm.slane %v2632_v15, 2  ;;  %v752_v35 = vperm.slane %v2645_v6, 2 }
  0x82   : > { %v792_v43 = vmul.f32 %v736_v5, %v3174_v18  ;;  %v756_v10 = vperm.slane %v2649_v39, 2  ;;  %v796_v32 = vmul.f32 %v740_v63, %v3175_v62  ;;  %v734_v1 = vperm.slane %v2600_v11, 0 }
  0x83   : > { %v800_v33 = vmul.f32 %v744_v27, %v3176_v9  ;;  %v760_v3 = vperm.slane %v2654_v44, 2  ;;  %v804_v12 = vmul.f32 %v748_v25, %v3177_v46  ;;  %v808_v56 = vmul.f32 %v752_v35, %v3178_v16 }
  0x84   : > { %v844_v13 = vsel %vm3108_vm0, %v792_v43, 0.0  ;;  %v845_v49 = vsel %vm3108_vm0, %v796_v32, 0.0  ;;  %v812_v61 = vmul.f32 %v756_v10, %v3179_v20  ;;  %v738_v37 = vperm.slane %v2608_v14, 0 }
  0x85   : > { %v847_v17 = vsel %vm3108_vm0, %v800_v33, 0.0  ;;  %v816_v60 = vmul.f32 %v760_v3, %v3180_v7  ;;  %v846_v54 = vadd.f32 %v845_v49, %v844_v13  ;;  %v849_v52 = vsel %vm3108_vm0, %v804_v12, 0.0 }
  0x86   : > { %v742_v19 = vperm.slane %v2627_v55, 0  ;;  %v746_v53 = vperm.slane %v2632_v15, 0  ;;  %v851_v22 = vsel %vm3108_vm0, %v808_v56, 0.0  ;;  %v750_v57 = vperm.slane %v2645_v6, 0 }
  0x87   : > { %v848_v24 = vadd.f32 %v847_v17, %v846_v54  ;;  %v754_v45 = vperm.slane %v2649_v39, 0  ;;  %v758_v5 = vperm.slane %v2654_v44, 0  ;;  %v790_v26 = vmul.f32 %v734_v1, %v2343_v36 }
  0x88   : > { %v794_v63 = vmul.f32 %v738_v37, %v2353_v40  ;;  %v798_v27 = vmul.f32 %v742_v19, %v2371_v0  ;;  %v874_v35 = vperm.slane %v2675_v51, 2  ;;  %v802_v18 = vmul.f32 %v746_v53, %v2377_v50 }
  0x89   : > { %v850_v25 = vadd.f32 %v849_v52, %v848_v24  ;;  %v806_v43 = vmul.f32 %v750_v57, %v2391_v4  ;;  %v853_v10 = vsel %vm3108_vm0, %v812_v61, 0.0  ;;  %v818_v62 = vsel %vm3108_vm0, %v790_v26, 0.0 }
  0x8a   : > { %v819_v32 = vsel %vm3108_vm0, %v794_v63, 0.0  ;;  %v821_v9 = vsel %vm3108_vm0, %v798_v27, 0.0  ;;  %v855_v40 = vsel %vm3108_vm0, %v816_v60, 0.0  ;;  %v810_v0 = vmul.f32 %v754_v45, %v2396_v58 }
  0x8b   : > { %v852_v36 = vadd.f32 %v851_v22, %v850_v25  ;;  %v820_v33 = vadd.f32 %v819_v32, %v818_v62  ;;  %v814_v3 = vmul.f32 %v758_v5, %v2406_v8  ;;  %v823_v50 = vsel %vm3108_vm0, %v802_v18, 0.0 }
  0x8c   : > { %v825_v4 = vsel %vm3108_vm0, %v806_v43, 0.0  ;;  %v737_v46 = vperm.slane %v2600_v11, 3  ;;  %v741_v56 = vperm.slane %v2608_v14, 3  ;;  %v745_v13 = vperm.slane %v2627_v55, 3 }
  0x8d   : > { %v854_v12 = vadd.f32 %v853_v10, %v852_v36  ;;  %v822_v16 = vadd.f32 %v821_v9, %v820_v33  ;;  %v749_v49 = vperm.slane %v2632_v15, 3  ;;  %v753_v17 = vperm.slane %v2645_v6, 3 }
  0x8e   : > { %v757_v58 = vperm.slane %v2649_v39, 3  ;;  %v761_v8 = vperm.slane %v2654_v44, 3  ;;  %v793_v61 = vmul.f32 %v737_v46, %v2452_v59  ;;  %v797_v7 = vmul.f32 %v741_v56, %v2462_v48 }
  0x8f   : > { %v856_v1 = vadd.f32 %v855_v40, %v854_v12  ;;  %v824_v20 = vadd.f32 %v823_v50, %v822_v16  ;;  %v827_v60 = vsel %vm3108_vm0, %v810_v0, 0.0  ;;  %v801_v54 = vmul.f32 %v745_v13, %v2473_v47 }
  0x90   : > { %v805_v52 = vmul.f32 %v749_v49, %v2478_v42  ;;  %v829_v53 = vsel %vm3108_vm0, %v814_v3, 0.0  ;;  %v857_v24 = vsel %vm3108_vm0, %v793_v61, 0.0  ;;  %v872_v22 = vperm.slane %v2675_v51, 0  ;;  %v1204_v61 = vld [vmem:[%s3060_s7 + $0x10] sm:$0xff] }
  0x91   : > { %v882_v37 = vadd.f32 %v874_v35, %v856_v1  ;;  %v826_v19 = vadd.f32 %v825_v4, %v824_v20  ;;  %v809_v57 = vmul.f32 %v753_v17, %v2484_v21  ;;  %v858_v59 = vsel %vm3108_vm0, %v797_v7, 0.0  ;;  %v1209_v1 = vld [vmem:[%s3060_s7 + $0x38] sm:$0xff]  ;;  %v1203_v20 = vld [vmem:[%s3060_s7 + $0x8] sm:$0xff] }
  0x92   : > { %v860_v48 = vsel %vm3108_vm0, %v801_v54, 0.0  ;;  %v813_v47 = vmul.f32 %v757_v58, %v2489_v38  ;;  %v817_v42 = vmul.f32 %v761_v8, %v2497_v28  ;;  %v859_v5 = vadd.f32 %v858_v59, %v857_v24  ;;  %v1208_v8 = vld [vmem:[%s3060_s7 + $0x30] sm:$0xff]  ;;  %1298 = vmatpush.msra.mxu3 %v1209_v1  ;;  %v1205_v7 = vld [vmem:[%s3060_s7 + $0x18] sm:$0xff]  ;;  %v1784_v54 = vld [vmem:[%s3059_s6] ss:$0 sm:$0xff] }
  0x93   : > { %1168 = vmatmul.f32.vlgmr.msrb.gmra.mxu2 %v882_v37  ;;  %v828_v45 = vadd.f32 %v827_v60, %v826_v19  ;;  %v862_v26 = vsel %vm3108_vm0, %v805_v52, 0.0  ;;  %v735_v63 = vperm.slane %v2600_v11, 1  ;;  %v739_v27 = vperm.slane %v2608_v14, 1  ;;  %v1202_v60 = vld [vmem:[%s3060_s7] sm:$0xff] }
  0x94   : > { %v743_v25 = vperm.slane %v2627_v55, 1  ;;  %v861_v35 = vadd.f32 %v860_v48, %v859_v5  ;;  %v747_v18 = vperm.slane %v2632_v15, 1  ;;  %v751_v43 = vperm.slane %v2645_v6, 1  ;;  %1278 = vmatpush.msra.mxu2 %v1208_v8  ;;  %1299 = vmatpush.msra.mxu3 %v1205_v7 }
  0x95   : > { %v830_v21 = vadd.f32 %v829_v53, %v828_v45  ;;  %v864_v10 = vsel %vm3108_vm0, %v809_v57, 0.0  ;;  %v755_v38 = vperm.slane %v2649_v39, 1  ;;  %v791_v28 = vmul.f32 %v735_v63, %v2539_v2  ;;  %v1311_v63 = vld [vmem:[%s3062_s9 + $0x38] sm:$0xff] }
  0x96   : > { %v795_v62 = vmul.f32 %v739_v27, %v2544_v34  ;;  %v863_v11 = vadd.f32 %v862_v26, %v861_v35  ;;  %v799_v14 = vmul.f32 %v743_v25, %v2551_v30  ;;  %v803_v55 = vmul.f32 %v747_v18, %v2554_v31  ;;  %1279 = vmatpush.msra.mxu2 %v1204_v61  ;;  %v1310_v26 = vld [vmem:[%s3062_s9 + $0x30] sm:$0xff]  ;;  %v1308_v27 = vld [vmem:[%s3062_s9 + $0x20] sm:$0xff]  ;;  %v1309_v25 = vld [vmem:[%s3062_s9 + $0x28] sm:$0xff] }
  0x97   : > { %v880_v32 = vadd.f32 %v872_v22, %v830_v21  ;;  %v866_v9 = vsel %vm3108_vm0, %v813_v47, 0.0  ;;  %v759_v15 = vperm.slane %v2654_v44, 1  ;;  %v831_v6 = vsel %vm3108_vm0, %v791_v28, 0.0  ;;  %v1306_v21 = vld [vmem:[%s3062_s9 + $0x10] sm:$0xff]  ;;  %v1307_v35 = vld [vmem:[%s3062_s9 + $0x18] sm:$0xff]  ;;  %v1304_v18 = vld [vmem:[%s3062_s9] sm:$0xff] }
  0x98   : > { %v865_v36 = vadd.f32 %v864_v10, %v863_v11  ;;  %v807_v39 = vmul.f32 %v751_v43, %v2558_v41  ;;  %v832_v2 = vsel %vm3108_vm0, %v795_v62, 0.0  ;;  %v834_v34 = vsel %vm3108_vm0, %v799_v14, 0.0  ;;  %1379 = vmatpush.msrb.mxu2 %v1310_v26  ;;  %v1305_v43 = vld [vmem:[%s3062_s9 + $0x8] sm:$0xff] }
  0x99   : > { %1128 = vmatmul.f32.vlgmr.msrb.gmra.mxu0 %v880_v32  ;;  %v868_v40 = vsel %vm3108_vm0, %v817_v42, 0.0  ;;  %v833_v0 = vadd.f32 %v832_v2, %v831_v6  ;;  %v875_v31 = vperm.slane %v2675_v51, 3  ;;  %v811_v33 = vmul.f32 %v755_v38, %v2561_v23  ;;  %v1210_v2 = vld [vmem:[%s3061_s8] sm:$0xf] }
  0x9a   : > { %v867_v30 = vadd.f32 %v866_v9, %v865_v36  ;;  %v836_v44 = vsel %vm3108_vm0, %v803_v55, 0.0  ;;  %v815_v4 = vmul.f32 %v759_v15, %v2565_v29  ;;  %v838_v41 = vsel %vm3108_vm0, %v807_v39, 0.0  ;;  %v1207_v29 = vld [vmem:[%s3060_s7 + $0x28] sm:$0xff]  ;;  %1380 = vmatpush.msrb.mxu2 %v1306_v21 }
  0x9b   : > { %v835_v3 = vadd.f32 %v834_v34, %v833_v0  ;;  %v840_v16 = vsel %vm3108_vm0, %v811_v33, 0.0  ;;  %v873_v17 = vperm.slane %v2675_v51, 1  ;;  %1258 = vmatpush.msra.mxu1 %v1207_v29  ;;  %v1206_v51 = vld [vmem:[%s3060_s7 + $0x20] sm:$0xff]  ;;  %v1213_v34 = vperm.slane %v1210_v2, 1 }
  0x9c   : > { %v869_v50 = vadd.f32 %v868_v40, %v867_v30  ;;  %v842_v13 = vsel %vm3108_vm0, %v815_v4, 0.0  ;;  %1238 = vmatpush.msra.mxu0 %v1206_v51  ;;  %v1212_v40 = vperm.slane %v1210_v2, 0 }
  0x9d   : > { %v837_v46 = vadd.f32 %v836_v44, %v835_v3  ;;  %1259 = vmatpush.msra.mxu1 %v1203_v20  ;;  %v1214_v3 = vperm.slane %v1210_v2, 2 }
  0x9e   : > { %v883_v12 = vadd.f32 %v875_v31, %v869_v50  ;;  %1239 = vmatpush.msra.mxu0 %v1202_v60  ;;  %v1215_v50 = vperm.slane %v1210_v2, 3 }
  0x9f   : > { %v839_v56 = vadd.f32 %v838_v41, %v837_v46 }
  0xa0   : > { %1188 = vmatmul.f32.vlgmr.msrb.gmra.mxu3 %v883_v12  ;;  %1339 = vmatpush.msrb.mxu0 %v1308_v27 }
  0xa1   : > { %v841_v49 = vadd.f32 %v840_v16, %v839_v56  ;;  %1399 = vmatpush.msrb.mxu3 %v1311_v63 }
  0xa2   : > { %1340 = vmatpush.msrb.mxu0 %v1304_v18 }
  0xa3   : > { %v843_v23 = vadd.f32 %v842_v13, %v841_v49  ;;  %1400 = vmatpush.msrb.mxu3 %v1307_v35 }
  0xa5   : > { %v881_v58 = vadd.f32 %v873_v17, %v843_v23 }
  0xa7   : > { %1148 = vmatmul.f32.vlgmr.msrb.gmra.mxu1 %v881_v58 }
  0xa8   : > { %1359 = vmatpush.msrb.mxu1 %v1309_v25 }
  0xaa   : > { %1360 = vmatpush.msrb.mxu1 %v1305_v43 }
  0xcc   : > { %v1089_v53 = vpop.f32.mrf.mxu2 }
  0xd6   : > { %v1049_v52 = vpop.f32.mrf.mxu0 }
  0xd7   : > { %v1050_v37 = vadd.f32 %v1784_v54, %v1049_v52 }
  0xef   : > { %v1109_v22 = vpop.f32.mrf.mxu3 }
  0xfc   : > { %v1069_v19 = vpop.f32.mrf.mxu1 }
  0xfd   : > { %v1070_v24 = vadd.f32 %v1069_v19, %v1050_v37 }
  0xff   : > { %v1090_v57 = vadd.f32 %v1089_v53, %v1070_v24 }
 0x101   : > { %v1110_v59 = vadd.f32 %v1109_v22, %v1090_v57 }
 0x103   : > { %v1192_v48 = vadd.f32 3.0, %v1110_v59 }
 0x105   : > { %v1193_v45 = vmax.f32 %v1192_v48, 0.0  ;;  %v2827_v48 = vld [vmem:[%s3063_s10] sm:$0xf] }
 0x107   : > { %v1194_v47 = vmin.f32 %v1193_v45, 6.0 }
 0x109   : > { %v1195_v42 = vmul.f32 0.16666667, %v1194_v47 }
 0x10b   : > { %v1196_v5 = vmul.f32 %v1195_v42, %v1110_v59  ;;  %v1314_v42 = vperm.slane %v2827_v48, 0 }
 0x10d   : > { %1766 = vmatmul.msk.f32.vlgmr.msra.gmra.mxu1 %vm1220_vm15, %v1196_v5  ;;  %1767 = vmatmul.msk.f32.vlgmr.msra.gmra.mxu2 %vm1220_vm15, %v1196_v5 }
 0x10e   : > { %1768 = vmatmul.msk.f32.vlgmr.msra.gmra.mxu3 %vm1220_vm15, %v1196_v5  ;;  %1765 = vmatmul.msk.f32.vlgmr.msra.gmra.mxu0 %vm1220_vm15, %v1196_v5 }
 0x116   : > { %v1129_v10 = vpop.f32.mrf.mxu0  ;;  %v1169_v62 = vpop.f32.mrf.mxu2 }
 0x117   : > { %v1130_v38 = vadd.f32 %v1784_v54, %v1129_v10 }
 0x123   : > { %v1189_v11 = vpop.f32.mrf.mxu3 }
 0x124   : > { %v1149_v28 = vpop.f32.mrf.mxu1 }
 0x125   : > { %v1150_v32 = vadd.f32 %v1149_v28, %v1130_v38 }
 0x127   : > { %v1170_v14 = vadd.f32 %v1169_v62, %v1150_v32 }
 0x129   : > { %v1190_v55 = vadd.f32 %v1189_v11, %v1170_v14 }
 0x12b   : > { %v1197_v9 = vadd.f32 3.0, %v1190_v55 }
 0x12d   : > { %v1198_v15 = vmax.f32 %v1197_v9, 0.0 }
 0x12f   : > { %v1199_v6 = vmin.f32 %v1198_v15, 6.0 }
 0x131   : > { %v1200_v36 = vmul.f32 0.16666667, %v1199_v6 }
 0x133   : > { %v1201_v39 = vmul.f32 %v1200_v36, %v1190_v55  ;;  %v1315_v36 = vperm.slane %v2827_v48, 1 }
 0x135   : > { %1769 = vmatmul.msk.f32.vlgmr.msrb.gmra.mxu0 %vm1220_vm15, %v1201_v39  ;;  %1770 = vmatmul.msk.f32.vlgmr.msrb.gmra.mxu1 %vm1220_vm15, %v1201_v39 }
 0x136   : > { %1771 = vmatmul.msk.f32.vlgmr.msrb.gmra.mxu2 %vm1220_vm15, %v1201_v39  ;;  %1772 = vmatmul.msk.f32.vlgmr.msrb.gmra.mxu3 %vm1220_vm15, %v1201_v39 }
 0x18a   : > { %v1261_v0 = vpop.f32.mrf.mxu1 }
 0x18b   : > { %v1262_v30 = vadd.f32 %v1261_v0, %v1213_v34  ;;  %v1241_v31 = vpop.f32.mrf.mxu0 }
 0x18c   : > { %v1242_v44 = vadd.f32 %v1241_v31, %v1212_v40 }
 0x18d   : > { %v1406_v33 = vsub.f32 0.0, %v1262_v30 }
 0x18e   : > { %v1405_v46 = vsub.f32 0.0, %v1242_v44 }
 0x18f   : > { %v1411_v4 = vmul.f32 1.442695, %v1406_v33 }
 0x190   : > { %v1281_v41 = vpop.f32.mrf.mxu2  ;;  %v1409_v17 = vmul.f32 1.442695, %v1405_v46 }
 0x191   : > { %v1282_v12 = vadd.f32 %v1281_v41, %v1214_v3  ;;  %v1301_v16 = vpop.f32.mrf.mxu3  ;;  %1785 = vpow2.f32 %v1411_v4  ;;  %v1316_v41 = vperm.slane %v2827_v48, 2 }
 0x192   : > { %v1302_v56 = vadd.f32 %v1301_v16, %v1215_v50 }
 0x193   : > { %v1407_v13 = vsub.f32 0.0, %v1282_v12 }
 0x194   : > { %v1408_v49 = vsub.f32 0.0, %v1302_v56 }
 0x195   : > { %v1413_v23 = vmul.f32 1.442695, %v1407_v13 }
 0x196   : > { %v1415_v58 = vmul.f32 1.442695, %v1408_v49  ;;  %v1317_v49 = vperm.slane %v2827_v48, 3 }
 0x197   : > { %1787 = vpow2.f32 %v1413_v23  ;;  %v1786_v29 = vpop.eup %1785 }
 0x198   : > { %1789 = vpow2.f32 %v1415_v58  ;;  %v1418_v1 = vadd.f32 1.0, %v1786_v29 }
 0x199   : > { %1791 = vpow2.f32 %v1409_v17 }
 0x19a   : > { %1793 = vrcp.f32 %v1418_v1  ;;  %vm1441_vm15 = vweird.f32 %v1418_v1  ;;  %v1445_v26 = vand.u32 2147483647, %v1418_v1  ;;  %v1447_v63 = vand.u32 2147483648, %v1418_v1 }
 0x19c   : > { %v1448_v2 = vor.u32 1.1754944e-38, %v1447_v63 }
 0x19d   : > { %v1788_v8 = vpop.eup %1787 }
 0x19e   : > { %v1790_v51 = vpop.eup %1789  ;;  %v1419_v20 = vadd.f32 1.0, %v1788_v8 }
 0x19f   : > { %v1792_v61 = vpop.eup %1791  ;;  %v1420_v7 = vadd.f32 1.0, %v1790_v51 }
 0x1a0   : > { %v2808_v60 = vadd.f32 1.0, %v1792_v61  ;;  %1795 = vrcp.f32 %v1419_v20  ;;  %v2811_v54 = vpop.eup %1793  ;;  %vm1456_vm8 = vweird.f32 %v1419_v20  ;;  %v1460_v35 = vand.u32 2147483647, %v1419_v20 }
 0x1a1   : > { %1797 = vrcp.f32 %v1420_v7  ;;  %v1437_v19 = vmul.f32 %v2811_v54, %v1418_v1  ;;  %vm1442_vm14 = vweird.f32 %v2811_v54  ;;  %v1462_v18 = vand.u32 2147483648, %v1419_v20 }
 0x1a2   : > { %1799 = vrcp.f32 %v2808_v60  ;;  %vm1426_vm13 = vweird.f32 %v2808_v60  ;;  %vm1471_vm11 = vweird.f32 %v1420_v7  ;;  %v1475_v10 = vand.u32 2147483647, %v1420_v7  ;;  %vm2839_vm7 = vmor %vm1441_vm15, %vm1442_vm14 }
 0x1a3   : > { %v1438_v57 = vsub.f32 1.0, %v1437_v19  ;;  %v1430_v11 = vand.u32 2147483647, %v2808_v60  ;;  %v1477_v14 = vand.u32 2147483648, %v1420_v7  ;;  %vm2853_vm14 = vcmp.eq.f32.partialorder %v1445_v26, 8.507059e+37 }
 0x1a4   : > { %v1432_v34 = vand.u32 2147483648, %v2808_v60  ;;  %v1463_v31 = vor.u32 1.1754944e-38, %v1462_v18  ;;  %vm2870_vm9 = vcmp.eq.f32.partialorder %v1475_v10, 8.507059e+37 }
 0x1a5   : > { %v1439_v5 = vmul.f32 %v2811_v54, %v1438_v57  ;;  %v1478_v4 = vor.u32 1.1754944e-38, %v1477_v14 }
 0x1a6   : > { %v2813_v52 = vpop.eup %1795  ;;  %v1433_v17 = vor.u32 1.1754944e-38, %v1432_v34 }
 0x1a7   : > { %v2815_v37 = vpop.eup %1797  ;;  %v1452_v24 = vmul.f32 %v2813_v52, %v1419_v20  ;;  %vm1457_vm12 = vweird.f32 %v2813_v52  ;;  %v1440_v28 = vadd.f32 %v2811_v54, %v1439_v5 }
 0x1a8   : > { %v2818_v53 = vpop.eup %1799  ;;  %v1467_v22 = vmul.f32 %v2815_v37, %v1420_v7  ;;  %vm1472_vm10 = vweird.f32 %v2815_v37  ;;  %vm2847_vm0 = vmor %vm1456_vm8, %vm1457_vm12  ;;  %vm2866_vm12 = vcmp.eq.f32.partialorder %v1460_v35, 8.507059e+37 }
 0x1a9   : > { %v1422_v59 = vmul.f32 %v2818_v53, %v2808_v60  ;;  %v1453_v45 = vsub.f32 1.0, %v1452_v24  ;;  %vm1427_vm15 = vweird.f32 %v2818_v53  ;;  %vm2862_vm8 = vmor %vm1471_vm11, %vm1472_vm10  ;;  %v1444_v3 = vsel %vm2839_vm7, %v2811_v54, %v1440_v28 }
 0x1aa   : > { %v1468_v47 = vsub.f32 1.0, %v1467_v22  ;;  %vm2889_vm7 = vmor %vm1426_vm13, %vm1427_vm15  ;;  %v1449_v29 = vsel %vm2853_vm14, %v1448_v2, %v1444_v3  ;;  %vm3197_vm10 = vcmask 1040384   ;;  %vm3199_vm13 = vcmask 1043458  }
 0x1ab   : > { %v1423_v27 = vsub.f32 1.0, %v1422_v59  ;;  %v1454_v25 = vmul.f32 %v2813_v52, %v1453_v45  ;;  %vm3198_vm11 = vmmov %vm3197_vm10  ;;  %vm3200_vm14 = vcmask 1044483   ;;  %vm3204_vm15 = vcmask 1045504  }
 0x1ac   : > { %v1469_v21 = vmul.f32 %v2815_v37, %v1468_v47 }
 0x1ad   : > { %v1424_v32 = vmul.f32 %v2818_v53, %v1423_v27  ;;  %v1455_v55 = vadd.f32 %v2813_v52, %v1454_v25 }
 0x1ae   : > { %v1470_v15 = vadd.f32 %v2815_v37, %v1469_v21 }
 0x1af   : > { %v1425_v50 = vadd.f32 %v2818_v53, %v1424_v32  ;;  %v1459_v46 = vsel %vm2847_vm0, %v2813_v52, %v1455_v55  ;;  %vm1431_vm0 = vcmp.eq.f32.partialorder %v1430_v11, 8.507059e+37  ;;  %v1561_v52 = vrot.slane %v1449_v29, 7 }
 0x1b0   : > { %v1474_v12 = vsel %vm2862_vm8, %v2815_v37, %v1470_v15  ;;  %v1464_v8 = vsel %vm2866_vm12, %v1463_v31, %v1459_v46 }
 0x1b1   : > { %v1479_v1 = vsel %vm2870_vm9, %v1478_v4, %v1474_v12  ;;  %v1429_v20 = vsel %vm2889_vm7, %v2818_v53, %v1425_v50  ;;  %v1562_v37 = vrot.slane %v1464_v8, 6  ;;  %vm3196_vm9 = vcmask 1046528  }
 0x1b2   : > { %v1342_v43 = vpop.f32.mrf.mxu0  ;;  %v1362_v0 = vpop.f32.mrf.mxu1  ;;  %v1563_v19 = vrot.slane %v1479_v1, 5  ;;  %v1434_v24 = vsel %vm1431_vm0, %v1433_v17, %v1429_v20 }
 0x1b3   : > { %v1343_v38 = vadd.f32 %v1342_v43, %v1314_v42  ;;  %v1363_v16 = vadd.f32 %v1362_v0, %v1315_v36  ;;  %v1567_v48 = vsel %vm699_vm1, %v1434_v24, %v1561_v52  ;;  %v1571_v47 = vsel %vm695_vm2, %v1434_v24, %v1561_v52 }
 0x1b4   : > { %v1568_v53 = vsel %vm701_vm3, %v1562_v37, %v1563_v19  ;;  %v1572_v42 = vsel %vm707_vm4, %v1562_v37, %v1563_v19  ;;  %v1576_v5 = vsel %vm713_vm5, %v1562_v37, %v1563_v19  ;;  %v1580_v26 = vsel %vm719_vm6, %v1562_v37, %v1563_v19 }
 0x1b5   : > { %v1481_v6 = vsub.f32 0.0, %v1343_v38  ;;  %v1482_v23 = vsub.f32 0.0, %v1363_v16  ;;  %v1575_v27 = vsel %vm701_vm3, %v1434_v24, %v1561_v52  ;;  %v1579_v25 = vsel %vm707_vm4, %v1434_v24, %v1561_v52 }
 0x1b6   : > { %v1565_v21 = vsel %vm695_vm2, %v1562_v37, %v1563_v19  ;;  %vm3195_vm1 = vcmask 1042433   ;;  %v1584_v18 = vsel %vm3196_vm9, %v1563_v19, %v1562_v37  ;;  %v1588_v43 = vsel %vm3197_vm10, %v1562_v37, %v1563_v19 }
 0x1b7   : > { %v1485_v44 = vmul.f32 1.442695, %v1481_v6  ;;  %v1487_v61 = vmul.f32 1.442695, %v1482_v23  ;;  %v1569_v35 = vsel %vm3195_vm1, %v1567_v48, %v1568_v53  ;;  %v1564_v38 = vsel %vm3198_vm11, %v1434_v24, %v1561_v52 }
 0x1b8   : > { %v1573_v28 = vsel %vm3199_vm13, %v1571_v47, %v1572_v42  ;;  %v1577_v62 = vsel %vm3200_vm14, %v1575_v27, %v1576_v5  ;;  %vm3201_vm3 = vcmask 1045508   ;;  %v1583_v14 = vsel %vm713_vm5, %v1434_v24, %v1561_v52 }
 0x1b9   : > { %1801 = vpow2.f32 %v1485_v44  ;;  %v1382_v56 = vpop.f32.mrf.mxu2  ;;  %v1402_v58 = vpop.f32.mrf.mxu3  ;;  %v1581_v32 = vsel %vm3201_vm3, %v1579_v25, %v1580_v26  ;;  %v1587_v55 = vsel %vm719_vm6, %v1434_v24, %v1561_v52  ;;  %vm3202_vm2 = vcmask 1041408  }
 0x1ba   : > { %v1383_v51 = vadd.f32 %v1382_v56, %v1316_v41  ;;  %v1403_v60 = vadd.f32 %v1402_v58, %v1317_v49  ;;  %1803 = vpow2.f32 %v1487_v61  ;;  %v2927_v9 = vsel %vm3202_vm2, %v1564_v38, %v1565_v21 }
 0x1bb   : > { %v2931_v36 = vrot.slane %v1569_v35, 1  ;;  %vm3203_vm4 = vcmask 1046533   ;;  %v1589_v2 = vsel %vm3204_vm15, %v1588_v43, %v1587_v55  ;;  %v2935_v34 = vrot.slane %v1573_v28, 2 }
 0x1bc   : > { %v1483_v7 = vsub.f32 0.0, %v1383_v51  ;;  %v1484_v59 = vsub.f32 0.0, %v1403_v60  ;;  %v1585_v39 = vsel %vm3203_vm4, %v1583_v14, %v1584_v18  ;;  %v2937_v40 = vrot.slane %v1577_v62, 3 }
 0x1bd   : > { %v2939_v0 = vrot.slane %v1581_v32, 4  ;;  %v1591_v44 = vperm.slane %v2927_v9, 0  ;;  %v2945_v50 = vrot.slane %v1585_v39, 5  ;;  %v2947_v4 = vrot.slane %v1589_v2, 6 }
 0x1be   : > { %v1489_v57 = vmul.f32 1.442695, %v1483_v7  ;;  %v1491_v45 = vmul.f32 1.442695, %v1484_v59  ;;  %v1595_v56 = vperm.slane %v2931_v36, 0  ;;  %v1599_v13 = vperm.slane %v2935_v34, 0 }
 0x1bf   : > { %v1802_v54 = vpop.eup %1801  ;;  %v1603_v49 = vperm.slane %v2937_v40, 0  ;;  %v1607_v17 = vperm.slane %v2939_v0, 0  ;;  %v1611_v8 = vperm.slane %v2945_v50, 0  ;;  %v1615_v1 = vperm.slane %v2947_v4, 0 }
 0x1c0   : > { %v2903_v22 = vadd.f32 1.0, %v1802_v54  ;;  %v1804_v63 = vpop.eup %1803  ;;  %v1592_v51 = vperm.slane %v2927_v9, 1  ;;  %v1596_v7 = vperm.slane %v2931_v36, 1  ;;  %v1600_v52 = vperm.slane %v2935_v34, 1 }
 0x1c1   : > { %v2918_v10 = vadd.f32 1.0, %v1804_v63  ;;  %v1604_v37 = vperm.slane %v2937_v40, 1  ;;  %v1608_v19 = vperm.slane %v2939_v0, 1  ;;  %v1612_v5 = vperm.slane %v2945_v50, 1 }
 0x1c2   : > { %1805 = vrcp.f32 %v2903_v22  ;;  %v1508_v3 = vand.u32 2147483648, %v2903_v22  ;;  %v1506_v46 = vand.u32 2147483647, %v2903_v22  ;;  %vm1502_vm6 = vweird.f32 %v2903_v22 }
 0x1c3   : > { %1807 = vpow2.f32 %v1489_v57  ;;  %v1523_v59 = vand.u32 2147483648, %v2918_v10  ;;  %v1616_v26 = vperm.slane %v2947_v4, 1  ;;  %vm1517_vm0 = vweird.f32 %v2918_v10 }
 0x1c4   : > { %1809 = vpow2.f32 %v1491_v45  ;;  %v1509_v29 = vor.u32 1.1754944e-38, %v1508_v3  ;;  %vm1507_vm12 = vcmp.eq.f32.partialorder %v1506_v46, 8.507059e+37  ;;  %v1521_v45 = vand.u32 2147483647, %v2918_v10 }
 0x1c5   : > { %1811 = vrcp.f32 %v2918_v10  ;;  %v1524_v18 = vor.u32 1.1754944e-38, %v1523_v59  ;;  %v1593_v14 = vperm.slane %v2927_v9, 2  ;;  %v1597_v39 = vperm.slane %v2931_v36, 2 }
 0x1c6   : > { %vm1522_vm9 = vcmp.eq.f32.partialorder %v1521_v45, 8.507059e+37 }
 0x1c8   : > { %v1806_v11 = vpop.eup %1805 }
 0x1c9   : > { %v1808_v15 = vpop.eup %1807  ;;  %v1498_v6 = vmul.f32 %v1806_v11, %v2903_v22  ;;  %vm1503_vm5 = vweird.f32 %v1806_v11 }
 0x1ca   : > { %v2941_v30 = vadd.f32 1.0, %v1808_v15  ;;  %v1810_v31 = vpop.eup %1809  ;;  %vm1504_vm8 = vmor %vm1502_vm6, %vm1503_vm5 }
 0x1cb   : > { %v1499_v33 = vsub.f32 1.0, %v1498_v6  ;;  %v2951_v12 = vadd.f32 1.0, %v1810_v31  ;;  %v1812_v16 = vpop.eup %1811 }
 0x1cc   : > { %1813 = vrcp.f32 %v2941_v30  ;;  %v1513_v58 = vmul.f32 %v1812_v16, %v2918_v10  ;;  %vm1518_vm7 = vweird.f32 %v1812_v16  ;;  %v1536_v38 = vand.u32 2147483647, %v2941_v30 }
 0x1cd   : > { %v1500_v41 = vmul.f32 %v1806_v11, %v1499_v33  ;;  %1815 = vrcp.f32 %v2951_v12  ;;  %vm1519_vm1 = vmor %vm1517_vm0, %vm1518_vm7  ;;  %v1538_v62 = vand.u32 2147483648, %v2941_v30  ;;  %vm1532_vm11 = vweird.f32 %v2941_v30 }
 0x1ce   : > { %v1514_v61 = vsub.f32 1.0, %v1513_v58  ;;  %vm1537_vm13 = vcmp.eq.f32.partialorder %v1536_v38, 8.507059e+37  ;;  %vm1547_vm2 = vweird.f32 %v2951_v12 }
 0x1cf   : > { %v1501_v23 = vadd.f32 %v1806_v11, %v1500_v41 }
 0x1d0   : > { %v1515_v53 = vmul.f32 %v1812_v16, %v1514_v61  ;;  %v1613_v61 = vperm.slane %v2945_v50, 2 }
 0x1d1   : > { %v1505_v20 = vsel %vm1504_vm8, %v1806_v11, %v1501_v23 }
 0x1d2   : > { %v2964_v60 = vpop.eup %1813  ;;  %v1510_v54 = vsel %vm1507_vm12, %v1509_v29, %v1505_v20  ;;  %v1516_v25 = vadd.f32 %v1812_v16, %v1515_v53  ;;  %v1605_v29 = vperm.slane %v2937_v40, 2 }
 0x1d3   : > { %v1647_v24 = vmul.f32 %v1591_v44, %v1510_v54  ;;  %v1651_v22 = vmul.f32 %v1595_v56, %v1510_v54  ;;  %v1655_v57 = vmul.f32 %v1599_v13, %v1510_v54  ;;  %v1659_v48 = vmul.f32 %v1603_v49, %v1510_v54  ;;  %v2978_v47 = vpop.eup %1815 }
 0x1d4   : > { %v1663_v42 = vmul.f32 %v1607_v17, %v1510_v54  ;;  %v1528_v63 = vmul.f32 %v2964_v60, %v2941_v30  ;;  %v1667_v27 = vmul.f32 %v1611_v8, %v1510_v54  ;;  %v1543_v21 = vmul.f32 %v2978_v47, %v2951_v12 }
 0x1d5   : > { %1675 = vst [vmem:[%s2971_s16] sm:$0x7f] %v1647_v24  ;;  %v1671_v35 = vmul.f32 %v1615_v1, %v1510_v54  ;;  %v1520_v28 = vsel %vm1519_vm1, %v1812_v16, %v1516_v25  ;;  %vm1533_vm10 = vweird.f32 %v2964_v60  ;;  %v1539_v44 = vor.u32 1.1754944e-38, %v1538_v62 }
 0x1d6   : > { %1679 = vst [vmem:[%s2971_s16 + $0x20] sm:$0x7f] %v1651_v22  ;;  %v1529_v43 = vsub.f32 1.0, %v1528_v63  ;;  %v1544_v32 = vsub.f32 1.0, %v1543_v21  ;;  %v1525_v10 = vsel %vm1522_vm9, %v1524_v18, %v1520_v28  ;;  %vm1534_vm14 = vmor %vm1532_vm11, %vm1533_vm10  ;;  %vm1548_vm3 = vweird.f32 %v2978_v47 }
 0x1d7   : > { %1683 = vst [vmem:[%s2971_s16 + $0x40] sm:$0x7f] %v1655_v57  ;;  %v1648_v55 = vmul.f32 %v1592_v51, %v1525_v10  ;;  %v1652_v15 = vmul.f32 %v1596_v7, %v1525_v10  ;;  %v1656_v6 = vmul.f32 %v1600_v52, %v1525_v10  ;;  %v1660_v2 = vmul.f32 %v1604_v37, %v1525_v10  ;;  %vm3015_vm4 = vmor %vm1547_vm2, %vm1548_vm3 }
 0x1d8   : > { %1687 = vst [vmem:[%s2971_s16 + $0x60] sm:$0x7f] %v1659_v48  ;;  %v1530_v11 = vmul.f32 %v2964_v60, %v1529_v43  ;;  %v1664_v33 = vmul.f32 %v1608_v19, %v1525_v10  ;;  %v1545_v3 = vmul.f32 %v2978_v47, %v1544_v32  ;;  %v1668_v41 = vmul.f32 %v1612_v5, %v1525_v10 }
 0x1d9   : > { %1691 = vst [vmem:[%s2971_s16 + $0x80] sm:$0x7f] %v1663_v42  ;;  %v1553_v30 = vand.u32 2147483648, %v2951_v12  ;;  %v1672_v16 = vmul.f32 %v1616_v26, %v1525_v10  ;;  %v1551_v49 = vand.u32 2147483647, %v2951_v12  ;;  %v1601_v17 = vperm.slane %v2935_v34, 2 }
 0x1da   : > { %1695 = vst [vmem:[%s2971_s16 + $0xa0] sm:$0x7f] %v1667_v27  ;;  %v1531_v31 = vadd.f32 %v2964_v60, %v1530_v11  ;;  %v1546_v13 = vadd.f32 %v2978_v47, %v1545_v3  ;;  %v1609_v12 = vperm.slane %v2939_v0, 2  ;;  %v1594_v19 = vperm.slane %v2927_v9, 3 }
 0x1db   : > { %1699 = vst [vmem:[%s2971_s16 + $0xc0] sm:$0x7f] %v1671_v35  ;;  %v1554_v20 = vor.u32 1.1754944e-38, %v1553_v30  ;;  %vm1552_vm15 = vcmp.eq.f32.partialorder %v1551_v49, 8.507059e+37  ;;  %v1598_v22 = vperm.slane %v2931_v36, 3  ;;  %v1602_v57 = vperm.slane %v2935_v34, 3 }
 0x1dc   : > { %1676 = vst [vmem:[%s2971_s16 + $0x8] sm:$0x7f] %v1648_v55  ;;  %v1535_v46 = vsel %vm1534_vm14, %v2964_v60, %v1531_v31  ;;  %v1550_v1 = vsel %vm3015_vm4, %v2978_v47, %v1546_v13  ;;  %v1617_v60 = vperm.slane %v2947_v4, 2  ;;  %v1606_v48 = vperm.slane %v2937_v40, 3 }
 0x1dd   : > { %1680 = vst [vmem:[%s2971_s16 + $0x28] sm:$0x7f] %v1652_v15  ;;  %v1540_v56 = vsel %vm1537_vm13, %v1539_v44, %v1535_v46  ;;  %v1555_v52 = vsel %vm1552_vm15, %v1554_v20, %v1550_v1  ;;  %v1610_v9 = vperm.slane %v2939_v0, 3  ;;  %v1614_v36 = vperm.slane %v2945_v50, 3 }
 0x1de   : > { %1684 = vst [vmem:[%s2971_s16 + $0x48] sm:$0x7f] %v1656_v6  ;;  %v1649_v23 = vmul.f32 %v1593_v14, %v1540_v56  ;;  %v1653_v8 = vmul.f32 %v1597_v39, %v1540_v56  ;;  %v1657_v51 = vmul.f32 %v1601_v17, %v1540_v56  ;;  %v1661_v7 = vmul.f32 %v1605_v29, %v1540_v56 }
 0x1df   : > { %1688 = vst [vmem:[%s2971_s16 + $0x68] sm:$0x7f] %v1660_v2  ;;  %v1665_v54 = vmul.f32 %v1609_v12, %v1540_v56  ;;  %v1669_v37 = vmul.f32 %v1613_v61, %v1540_v56  ;;  %v1673_v24 = vmul.f32 %v1617_v60, %v1540_v56  ;;  %v1650_v59 = vmul.f32 %v1594_v19, %v1555_v52 }
 0x1e0   : > { %1692 = vst [vmem:[%s2971_s16 + $0x88] sm:$0x7f] %v1664_v33  ;;  %v1654_v53 = vmul.f32 %v1598_v22, %v1555_v52  ;;  %v1658_v45 = vmul.f32 %v1602_v57, %v1555_v52  ;;  %v1662_v47 = vmul.f32 %v1606_v48, %v1555_v52  ;;  %v1618_v34 = vperm.slane %v2947_v4, 3 }
 0x1e1   : > { %1696 = vst [vmem:[%s2971_s16 + $0xa8] sm:$0x7f] %v1668_v41  ;;  %v1666_v42 = vmul.f32 %v1610_v9, %v1555_v52  ;;  %v1670_v5 = vmul.f32 %v1614_v36, %v1555_v52 }
 0x1e2   : > { %1700 = vst [vmem:[%s2971_s16 + $0xc8] sm:$0x7f] %v1672_v16  ;;  %v1674_v26 = vmul.f32 %v1618_v34, %v1555_v52 }
 0x1e3   : > { %1677 = vst [vmem:[%s2971_s16 + $0x10] sm:$0x7f] %v1649_v23 }
 0x1e4   : > { %1681 = vst [vmem:[%s2971_s16 + $0x30] sm:$0x7f] %v1653_v8 }
 0x1e5   : > { %1685 = vst [vmem:[%s2971_s16 + $0x50] sm:$0x7f] %v1657_v51 }
 0x1e6   : > { %1689 = vst [vmem:[%s2971_s16 + $0x70] sm:$0x7f] %v1661_v7 }
 0x1e7   : > { %1693 = vst [vmem:[%s2971_s16 + $0x90] sm:$0x7f] %v1665_v54 }
 0x1e8   : > { %1697 = vst [vmem:[%s2971_s16 + $0xb0] sm:$0x7f] %v1669_v37 }
 0x1e9   : > { %1701 = vst [vmem:[%s2971_s16 + $0xd0] sm:$0x7f] %v1673_v24 }
 0x1ea   : > { %1678 = vst [vmem:[%s2971_s16 + $0x18] sm:$0x7f] %v1650_v59 }
 0x1eb   : > { %1682 = vst [vmem:[%s2971_s16 + $0x38] sm:$0x7f] %v1654_v53 }
 0x1ec   : > { %1686 = vst [vmem:[%s2971_s16 + $0x58] sm:$0x7f] %v1658_v45 }
 0x1ed   : > { %1690 = vst [vmem:[%s2971_s16 + $0x78] sm:$0x7f] %v1662_v47 }
 0x1ee   : > { %1694 = vst [vmem:[%s2971_s16 + $0x98] sm:$0x7f] %v1666_v42 }
 0x1ef   : > { %1698 = vst [vmem:[%s2971_s16 + $0xb8] sm:$0x7f] %v1670_v5 }
 0x1f0   : > { %1702 = vst [vmem:[%s2971_s16 + $0xd8] sm:$0x7f] %v1674_v26 }
 0x1f1 PF: > { %s21_s17 = sadd.s32 1, %s1823_s17  }
 0x1f2   : > { %p18_p4 = scmp.ge.s32.totalorder %s21_s17, 4  }
 0x1f4   :  { %20 = sbr.rel (!%p18_p4) target bundleno = 1 (0x1), region = 94 }

</bundles_post_ra>
